<compile_context>
chip_gen: v7x
topology: tpu7x:2x2x1
jax: 0.10.0
libtpu: 0.0.40
codegen_flags: <defaults>
</compile_context>

<pallas_src>
import jax
import jax.numpy as jnp
from jax.experimental import pallas as pl
from jax.experimental.pallas import tpu as pltpu

# ----------------- mini-BERT config (synthetic, deterministic init) -----------------
VOCAB = 100
TYPE_VOCAB = 2
MAX_POS = 64
HIDDEN = 32
NUM_LAYERS = 2
NUM_HEADS = 2
HEAD_DIM = HIDDEN // NUM_HEADS
INTERMEDIATE = 64
NUM_LABELS = 5
LN_EPS = 1e-12
NEG_INF = -1e9


# --------------------------------- fused Pallas kernel ------------------------------
def _layernorm(x, g, b):
    mu = jnp.mean(x, axis=-1, keepdims=True)
    xc = x - mu
    var = jnp.mean(xc * xc, axis=-1, keepdims=True)
    return xc * jax.lax.rsqrt(var + LN_EPS) * g + b


def _mm(a, w):
    # bf16 MXU operands, f32 accumulation.
    return jnp.dot(a.astype(jnp.bfloat16), w.astype(jnp.bfloat16),
                   preferred_element_type=jnp.float32)


def fused_bert_kernel(
    emb_ref, bias_ref, eg_ref, eb_ref,
    wqkv_ref, bqkv_ref, wo_ref, bo_ref, ln1g_ref, ln1b_ref,
    wi_ref, bi_ref, wf_ref, bf_ref, ln2g_ref, ln2b_ref,
    clsw_ref, clsb_ref, labels_ref, lmask_ref,
    loss_ref, tags_ref,
):
    # embedding LayerNorm (no zero-residual input)
    x = _layernorm(emb_ref[...], eg_ref[...], eb_ref[...])          # (M, H) f32
    bias = bias_ref[...]                                            # (M, M) additive mask
    scale = 1.0 / (HEAD_DIM ** 0.5)

    for l in range(NUM_LAYERS):
        # ---- self-attention: one wide fused QKV MXU push -------------------------------
        qkv = _mm(x, wqkv_ref[l]) + bqkv_ref[l]                     # (M, 3H) f32
        wo_l = wo_ref[l]                                            # (H, H) bf16
        head_outs = []
        for h in range(NUM_HEADS):
            q_h = qkv[:, h * HEAD_DIM:(h + 1) * HEAD_DIM]
            k_h = qkv[:, HIDDEN + h * HEAD_DIM: HIDDEN + (h + 1) * HEAD_DIM]
            v_h = qkv[:, 2 * HIDDEN + h * HEAD_DIM: 2 * HIDDEN + (h + 1) * HEAD_DIM]
            s = jax.lax.dot_general(
                q_h.astype(jnp.bfloat16), k_h.astype(jnp.bfloat16),
                (((1,), (1,)), ((), ())),
                preferred_element_type=jnp.float32) * scale + bias  # (M, M)
            s = s - jnp.max(s, axis=-1, keepdims=True)
            p = jnp.exp(s)
            p = p * pl.reciprocal(jnp.sum(p, axis=-1, keepdims=True), approx=True)
            ctx_h = jnp.dot(p.astype(jnp.bfloat16), v_h.astype(jnp.bfloat16),
                            preferred_element_type=jnp.float32)     # (M, Dh)
            # fold this head's slice of the output projection right here (no concat/transpose)
            head_outs.append(_mm(ctx_h, wo_l[h * HEAD_DIM:(h + 1) * HEAD_DIM, :]))
        attn_out = sum(head_outs) + bo_ref[l]                       # (M, H)
        # residual add + LayerNorm fused into the matmul epilogue
        x = _layernorm(attn_out + x, ln1g_ref[l], ln1b_ref[l])

        # ---- feed-forward ----------------------------------------------------------------
        inter = _mm(x, wi_ref[l]) + bi_ref[l]                       # (M, I)
        inter = 0.5 * inter * (1.0 + jnp.tanh(
            0.7978845608028654 * (inter + 0.044715 * inter * inter * inter)))
        ffn = _mm(inter, wf_ref[l]) + bf_ref[l]                     # (M, H)
        x = _layernorm(ffn + x, ln2g_ref[l], ln2b_ref[l])

    # ---- token classifier (Dropout -> Linear); dropout is identity in eval ---------------
    logits = _mm(x, clsw_ref[...]) + clsb_ref[...]                  # (M, NUM_LABELS) f32

    # ---- masked CrossEntropy over active tokens + argmax tags -----------------------------
    labels = labels_ref[...]                                        # (M, 1) i32
    lmask = lmask_ref[...]                                          # (M, 1) f32
    m_tok, n_lab = logits.shape
    col = jax.lax.broadcasted_iota(jnp.int32, (m_tok, n_lab), 1)
    onehot = (col == labels).astype(jnp.float32)
    mx = jnp.max(logits, axis=-1, keepdims=True)
    lse = mx + jnp.log(jnp.sum(jnp.exp(logits - mx), axis=-1, keepdims=True))
    picked = jnp.sum(logits * onehot, axis=-1, keepdims=True)
    per_tok = lse - picked                                          # (M, 1) token NLL
    num = jnp.sum(per_tok * lmask, keepdims=True)                   # (1, 1)
    den = jnp.maximum(jnp.sum(lmask, keepdims=True), 1.0)           # guard: no active tokens
    loss_ref[...] = num / den
    # argmax (first occurrence) over labels, all positions (matches logits.argmax(-1))
    tags_ref[...] = jnp.min(jnp.where(logits == mx, col, n_lab), axis=-1, keepdims=True)


def fused_forward(params, emb, attn_bias, labels_col, loss_mask_col):
    M = emb.shape[0]
    L, H, I = NUM_LAYERS, HIDDEN, INTERMEDIATE

    def full(shape):
        rank = len(shape)
        return pl.BlockSpec(shape, lambda i: (0,) * rank)

    in_specs = [
        full((M, H)), full((M, M)), full((1, H)), full((1, H)),
        full((L, H, 3 * H)), full((L, 1, 3 * H)),
        full((L, H, H)), full((L, 1, H)),
        full((L, 1, H)), full((L, 1, H)),
        full((L, H, I)), full((L, 1, I)),
        full((L, I, H)), full((L, 1, H)),
        full((L, 1, H)), full((L, 1, H)),
        full((H, NUM_LABELS)), full((1, NUM_LABELS)),
        full((M, 1)), full((M, 1)),
    ]
    return pl.pallas_call(
        fused_bert_kernel,
        grid=(1,),
        out_shape=(
            jax.ShapeDtypeStruct((1, 1), jnp.float32),
            jax.ShapeDtypeStruct((M, 1), jnp.int32),
        ),
        in_specs=in_specs,
        out_specs=(full((1, 1)), full((M, 1))),
        compiler_params=pltpu.CompilerParams(dimension_semantics=("arbitrary",)),
    )(emb, attn_bias, params["emb_ln_g"], params["emb_ln_b"],
      params["wqkv"], params["bqkv"], params["wo"], params["bo"],
      params["ln1_g"], params["ln1_b"], params["wi"], params["bi"],
      params["wf"], params["bf"], params["ln2_g"], params["ln2_b"],
      params["cls_w"], params["cls_b"], labels_col, loss_mask_col)


# ------------------------------ parameter construction ------------------------------
def init_params(key):
    def nrm(k, shape, dtype=jnp.float32):
        return (jax.random.normal(k, shape, jnp.float32) * 0.02).astype(dtype)

    keys = iter(jax.random.split(key, 32))
    L, H, I = NUM_LAYERS, HIDDEN, INTERMEDIATE
    p = {
        "word_emb": nrm(next(keys), (VOCAB, H)),
        "pos_emb": nrm(next(keys), (MAX_POS, H)),
        "type_emb": nrm(next(keys), (TYPE_VOCAB, H)),
        "emb_ln_g": jnp.ones((1, H), jnp.float32),
        "emb_ln_b": jnp.zeros((1, H), jnp.float32),
        # stacked per-layer weights; QKV fused along the output dimension; MXU weights in bf16
        "wqkv": nrm(next(keys), (L, H, 3 * H), jnp.bfloat16),
        "bqkv": jnp.zeros((L, 1, 3 * H), jnp.float32),
        "wo": nrm(next(keys), (L, H, H), jnp.bfloat16),
        "bo": jnp.zeros((L, 1, H), jnp.float32),
        "ln1_g": jnp.ones((L, 1, H), jnp.float32),
        "ln1_b": jnp.zeros((L, 1, H), jnp.float32),
        "wi": nrm(next(keys), (L, H, I), jnp.bfloat16),
        "bi": jnp.zeros((L, 1, I), jnp.float32),
        "wf": nrm(next(keys), (L, I, H), jnp.bfloat16),
        "bf": jnp.zeros((L, 1, H), jnp.float32),
        "ln2_g": jnp.ones((L, 1, H), jnp.float32),
        "ln2_b": jnp.zeros((L, 1, H), jnp.float32),
        "cls_w": nrm(next(keys), (H, NUM_LABELS), jnp.bfloat16),
        "cls_b": jnp.zeros((1, NUM_LABELS), jnp.float32),
    }
    return p


# ------------------------------------ forward ---------------------------------------
def forward(params, input_ids, attention_mask, token_type_ids, labels):
    B, S = input_ids.shape
    M = B * S
    mask_f = attention_mask.astype(jnp.float32)

    # embeddings (gathers are plain-JAX glue)
    emb = (params["word_emb"][input_ids]
           + params["pos_emb"][jnp.arange(S)][None, :, :]
           + params["type_emb"][token_type_ids])
    emb = emb.reshape(M, HIDDEN).astype(jnp.float32)

    # block-diagonal per-batch additive attention bias with key-padding mask
    row_batch = jnp.repeat(jnp.arange(B, dtype=jnp.int32), S)            # (M,)
    same_batch = row_batch[:, None] == row_batch[None, :]                # (M, M)
    key_valid = mask_f.reshape(M) > 0.5
    attn_bias = jnp.where(same_batch & key_valid[None, :], 0.0, NEG_INF).astype(jnp.float32)

    loss, tags = fused_forward(
        params, emb, attn_bias,
        labels.reshape(M, 1).astype(jnp.int32),
        mask_f.reshape(M, 1),
    )
    return loss[0, 0], tags.reshape(B, S)


# -------------------------------------- main -----------------------------------------
if __name__ == "__main__":
    key = jax.random.PRNGKey(0)
    k_param, k_ids, k_lbl = jax.random.split(key, 3)
    params = init_params(k_param)

    B, S = 2, 8
    input_ids = jax.random.randint(k_ids, (B, S), 0, VOCAB, dtype=jnp.int32)
    token_type_ids = jnp.zeros((B, S), jnp.int32)
    attention_mask = jnp.array(
        [[1, 1, 1, 1, 1, 1, 1, 1],
         [1, 1, 1, 1, 1, 1, 0, 0]], dtype=jnp.int32)
    labels = jax.random.randint(k_lbl, (B, S), 0, NUM_LABELS, dtype=jnp.int32)

    loss, sequence_tags = jax.jit(forward)(
        params, input_ids, attention_mask, token_type_ids, labels
    )
    jax.block_until_ready((loss, sequence_tags))
    print("KERNEL_OK")
</pallas_src>

<mosaic_0001>
module attributes {stable_mosaic.version = 11 : i64} {
  func.func @fused_bert_kernel(%arg0: i32, %arg1: memref<16x32xf32, #tpu.memory_space<vmem>>, %arg2: memref<16x16xf32, #tpu.memory_space<vmem>>, %arg3: memref<1x32xf32, #tpu.memory_space<vmem>>, %arg4: memref<1x32xf32, #tpu.memory_space<vmem>>, %arg5: memref<2x32x96xbf16, #tpu.memory_space<vmem>>, %arg6: memref<2x1x96xf32, #tpu.memory_space<vmem>>, %arg7: memref<2x32x32xbf16, #tpu.memory_space<vmem>>, %arg8: memref<2x1x32xf32, #tpu.memory_space<vmem>>, %arg9: memref<2x1x32xf32, #tpu.memory_space<vmem>>, %arg10: memref<2x1x32xf32, #tpu.memory_space<vmem>>, %arg11: memref<2x32x64xbf16, #tpu.memory_space<vmem>>, %arg12: memref<2x1x64xf32, #tpu.memory_space<vmem>>, %arg13: memref<2x64x32xbf16, #tpu.memory_space<vmem>>, %arg14: memref<2x1x32xf32, #tpu.memory_space<vmem>>, %arg15: memref<2x1x32xf32, #tpu.memory_space<vmem>>, %arg16: memref<2x1x32xf32, #tpu.memory_space<vmem>>, %arg17: memref<32x5xbf16, #tpu.memory_space<vmem>>, %arg18: memref<1x5xf32, #tpu.memory_space<vmem>>, %arg19: memref<16x1xi32, #tpu.memory_space<vmem>>, %arg20: memref<16x1xf32, #tpu.memory_space<vmem>>, %arg21: memref<1x1xf32, #tpu.memory_space<vmem>>, %arg22: memref<16x1xi32, #tpu.memory_space<vmem>>) attributes {dimension_semantics = [#tpu.dimension_semantics<arbitrary>], iteration_bounds = array<i64: 1>, scalar_prefetch = 0 : i64, scratch_operands = 0 : i64, tpu.core_type = #tpu.core_type<tc>, window_params = [{pipeline_mode = #tpu.pipeline_mode<synchronous>, transform_indices = @transform_0, window_bounds = array<i64: 16, 32>}, {pipeline_mode = #tpu.pipeline_mode<synchronous>, transform_indices = @transform_1, window_bounds = array<i64: 16, 16>}, {pipeline_mode = #tpu.pipeline_mode<synchronous>, transform_indices = @transform_2, window_bounds = array<i64: 1, 32>}, {pipeline_mode = #tpu.pipeline_mode<synchronous>, transform_indices = @transform_3, window_bounds = array<i64: 1, 32>}, {pipeline_mode = #tpu.pipeline_mode<synchronous>, transform_indices = @transform_4, window_bounds = array<i64: 2, 32, 96>}, {pipeline_mode = #tpu.pipeline_mode<synchronous>, transform_indices = @transform_5, window_bounds = array<i64: 2, 1, 96>}, {pipeline_mode = #tpu.pipeline_mode<synchronous>, transform_indices = @transform_6, window_bounds = array<i64: 2, 32, 32>}, {pipeline_mode = #tpu.pipeline_mode<synchronous>, transform_indices = @transform_7, window_bounds = array<i64: 2, 1, 32>}, {pipeline_mode = #tpu.pipeline_mode<synchronous>, transform_indices = @transform_8, window_bounds = array<i64: 2, 1, 32>}, {pipeline_mode = #tpu.pipeline_mode<synchronous>, transform_indices = @transform_9, window_bounds = array<i64: 2, 1, 32>}, {pipeline_mode = #tpu.pipeline_mode<synchronous>, transform_indices = @transform_10, window_bounds = array<i64: 2, 32, 64>}, {pipeline_mode = #tpu.pipeline_mode<synchronous>, transform_indices = @transform_11, window_bounds = array<i64: 2, 1, 64>}, {pipeline_mode = #tpu.pipeline_mode<synchronous>, transform_indices = @transform_12, window_bounds = array<i64: 2, 64, 32>}, {pipeline_mode = #tpu.pipeline_mode<synchronous>, transform_indices = @transform_13, window_bounds = array<i64: 2, 1, 32>}, {pipeline_mode = #tpu.pipeline_mode<synchronous>, transform_indices = @transform_14, window_bounds = array<i64: 2, 1, 32>}, {pipeline_mode = #tpu.pipeline_mode<synchronous>, transform_indices = @transform_15, window_bounds = array<i64: 2, 1, 32>}, {pipeline_mode = #tpu.pipeline_mode<synchronous>, transform_indices = @transform_16, window_bounds = array<i64: 32, 5>}, {pipeline_mode = #tpu.pipeline_mode<synchronous>, transform_indices = @transform_17, window_bounds = array<i64: 1, 5>}, {pipeline_mode = #tpu.pipeline_mode<synchronous>, transform_indices = @transform_18, window_bounds = array<i64: 16, 1>}, {pipeline_mode = #tpu.pipeline_mode<synchronous>, transform_indices = @transform_19, window_bounds = array<i64: 16, 1>}, {pipeline_mode = #tpu.pipeline_mode<synchronous>, transform_indices = @transform_20, window_bounds = array<i64: 1, 1>}, {pipeline_mode = #tpu.pipeline_mode<synchronous>, transform_indices = @transform_21, window_bounds = array<i64: 16, 1>}]} {
    %c0 = arith.constant 0 : index
    %c0_0 = arith.constant 0 : index
    %0 = vector.load %arg1[%c0, %c0_0] : memref<16x32xf32, #tpu.memory_space<vmem>>, vector<16x32xf32>
    %c0_1 = arith.constant 0 : index
    %c0_2 = arith.constant 0 : index
    %1 = vector.load %arg3[%c0_1, %c0_2] : memref<1x32xf32, #tpu.memory_space<vmem>>, vector<1x32xf32>
    %c0_3 = arith.constant 0 : index
    %c0_4 = arith.constant 0 : index
    %2 = vector.load %arg4[%c0_3, %c0_4] : memref<1x32xf32, #tpu.memory_space<vmem>>, vector<1x32xf32>
    %cst = arith.constant dense<0.000000e+00> : vector<16xf32>
    %3 = vector.multi_reduction <add>, %0, %cst [1] : vector<16x32xf32> to vector<16xf32>
    %4 = vector.shape_cast %3 : vector<16xf32> to vector<16x1xf32>
    %cst_5 = arith.constant 3.200000e+01 : f32
    %5 = vector.broadcast %cst_5 : f32 to vector<16x1xf32>
    %6 = arith.divf %4, %5 : vector<16x1xf32>
    %7 = vector.broadcast %6 : vector<16x1xf32> to vector<16x32xf32>
    %8 = arith.subf %0, %7 : vector<16x32xf32>
    %9 = arith.mulf %8, %8 : vector<16x32xf32>
    %cst_6 = arith.constant dense<0.000000e+00> : vector<16xf32>
    %10 = vector.multi_reduction <add>, %9, %cst_6 [1] : vector<16x32xf32> to vector<16xf32>
    %11 = vector.shape_cast %10 : vector<16xf32> to vector<16x1xf32>
    %cst_7 = arith.constant 3.200000e+01 : f32
    %12 = vector.broadcast %cst_7 : f32 to vector<16x1xf32>
    %13 = arith.divf %11, %12 : vector<16x1xf32>
    %cst_8 = arith.constant 9.99999996E-13 : f32
    %14 = vector.broadcast %cst_8 : f32 to vector<16x1xf32>
    %15 = arith.addf %13, %14 : vector<16x1xf32>
    %16 = math.rsqrt %15 : vector<16x1xf32>
    %17 = vector.broadcast %16 : vector<16x1xf32> to vector<16x32xf32>
    %18 = arith.mulf %8, %17 : vector<16x32xf32>
    %19 = vector.broadcast %1 : vector<1x32xf32> to vector<16x32xf32>
    %20 = arith.mulf %18, %19 : vector<16x32xf32>
    %21 = vector.broadcast %2 : vector<1x32xf32> to vector<16x32xf32>
    %22 = arith.addf %20, %21 : vector<16x32xf32>
    %c0_9 = arith.constant 0 : index
    %c0_10 = arith.constant 0 : index
    %23 = vector.load %arg2[%c0_9, %c0_10] : memref<16x16xf32, #tpu.memory_space<vmem>>, vector<16x16xf32>
    %c0_11 = arith.constant 0 : index
    %c0_12 = arith.constant 0 : index
    %c0_13 = arith.constant 0 : index
    %24 = vector.load %arg5[%c0_11, %c0_12, %c0_13] : memref<2x32x96xbf16, #tpu.memory_space<vmem>>, vector<1x32x96xbf16>
    %25 = vector.shape_cast %24 : vector<1x32x96xbf16> to vector<32x96xbf16>
    %26 = arith.truncf %22 : vector<16x32xf32> to vector<16x32xbf16>
    %cst_14 = arith.constant dense<0.000000e+00> : vector<16x96xf32>
    %27 = tpu.matmul %26, %25, %cst_14 {dimension_numbers = #tpu.dot_dimension_numbers<[1], [0], [0], [1], [0, 0, 1, 1], [], []>} : vector<16x32xbf16>, vector<32x96xbf16>, vector<16x96xf32> -> vector<16x96xf32>
    %c0_15 = arith.constant 0 : index
    %c0_16 = arith.constant 0 : index
    %c0_17 = arith.constant 0 : index
    %28 = vector.load %arg6[%c0_15, %c0_16, %c0_17] : memref<2x1x96xf32, #tpu.memory_space<vmem>>, vector<1x1x96xf32>
    %29 = vector.shape_cast %28 : vector<1x1x96xf32> to vector<1x96xf32>
    %30 = vector.broadcast %29 : vector<1x96xf32> to vector<16x96xf32>
    %31 = arith.addf %27, %30 : vector<16x96xf32>
    %c0_18 = arith.constant 0 : index
    %c0_19 = arith.constant 0 : index
    %c0_20 = arith.constant 0 : index
    %32 = vector.load %arg7[%c0_18, %c0_19, %c0_20] : memref<2x32x32xbf16, #tpu.memory_space<vmem>>, vector<1x32x32xbf16>
    %33 = vector.shape_cast %32 : vector<1x32x32xbf16> to vector<32x32xbf16>
    %34 = vector.extract_strided_slice %31 {offsets = [0, 0], sizes = [16, 16], strides = [1, 1]} : vector<16x96xf32> to vector<16x16xf32>
    %35 = vector.extract_strided_slice %31 {offsets = [0, 32], sizes = [16, 16], strides = [1, 1]} : vector<16x96xf32> to vector<16x16xf32>
    %36 = vector.extract_strided_slice %31 {offsets = [0, 64], sizes = [16, 16], strides = [1, 1]} : vector<16x96xf32> to vector<16x16xf32>
    %37 = arith.truncf %34 : vector<16x16xf32> to vector<16x16xbf16>
    %38 = arith.truncf %35 : vector<16x16xf32> to vector<16x16xbf16>
    %cst_21 = arith.constant dense<0.000000e+00> : vector<16x16xf32>
    %39 = tpu.matmul %37, %38, %cst_21 {dimension_numbers = #tpu.dot_dimension_numbers<[1], [1], [0], [0], [0, 0, 1, 0], [], []>} : vector<16x16xbf16>, vector<16x16xbf16>, vector<16x16xf32> -> vector<16x16xf32>
    %cst_22 = arith.constant 2.500000e-01 : f32
    %40 = vector.broadcast %cst_22 : f32 to vector<16x16xf32>
    %41 = arith.mulf %39, %40 : vector<16x16xf32>
    %42 = arith.addf %41, %23 : vector<16x16xf32>
    %cst_23 = arith.constant dense<0xFF800000> : vector<16xf32>
    %43 = vector.multi_reduction <maximumf>, %42, %cst_23 [1] : vector<16x16xf32> to vector<16xf32>
    %44 = vector.shape_cast %43 : vector<16xf32> to vector<16x1xf32>
    %45 = vector.broadcast %44 : vector<16x1xf32> to vector<16x16xf32>
    %46 = arith.subf %42, %45 : vector<16x16xf32>
    %47 = math.exp %46 : vector<16x16xf32>
    %cst_24 = arith.constant dense<0.000000e+00> : vector<16xf32>
    %48 = vector.multi_reduction <add>, %47, %cst_24 [1] : vector<16x16xf32> to vector<16xf32>
    %49 = vector.shape_cast %48 : vector<16xf32> to vector<16x1xf32>
    %50 = tpu.reciprocal %49 {approx = true} : vector<16x1xf32> -> vector<16x1xf32>
    %51 = vector.broadcast %50 : vector<16x1xf32> to vector<16x16xf32>
    %52 = arith.mulf %47, %51 : vector<16x16xf32>
    %53 = arith.truncf %52 : vector<16x16xf32> to vector<16x16xbf16>
    %54 = arith.truncf %36 : vector<16x16xf32> to vector<16x16xbf16>
    %cst_25 = arith.constant dense<0.000000e+00> : vector<16x16xf32>
    %55 = tpu.matmul %53, %54, %cst_25 {dimension_numbers = #tpu.dot_dimension_numbers<[1], [0], [0], [1], [0, 0, 1, 1], [], []>} : vector<16x16xbf16>, vector<16x16xbf16>, vector<16x16xf32> -> vector<16x16xf32>
    %56 = vector.extract_strided_slice %33 {offsets = [0, 0], sizes = [16, 32], strides = [1, 1]} : vector<32x32xbf16> to vector<16x32xbf16>
    %57 = arith.truncf %55 : vector<16x16xf32> to vector<16x16xbf16>
    %cst_26 = arith.constant dense<0.000000e+00> : vector<16x32xf32>
    %58 = tpu.matmul %57, %56, %cst_26 {dimension_numbers = #tpu.dot_dimension_numbers<[1], [0], [0], [1], [0, 0, 1, 1], [], []>} : vector<16x16xbf16>, vector<16x32xbf16>, vector<16x32xf32> -> vector<16x32xf32>
    %59 = vector.extract_strided_slice %31 {offsets = [0, 16], sizes = [16, 16], strides = [1, 1]} : vector<16x96xf32> to vector<16x16xf32>
    %60 = vector.extract_strided_slice %31 {offsets = [0, 48], sizes = [16, 16], strides = [1, 1]} : vector<16x96xf32> to vector<16x16xf32>
    %61 = vector.extract_strided_slice %31 {offsets = [0, 80], sizes = [16, 16], strides = [1, 1]} : vector<16x96xf32> to vector<16x16xf32>
    %62 = arith.truncf %59 : vector<16x16xf32> to vector<16x16xbf16>
    %63 = arith.truncf %60 : vector<16x16xf32> to vector<16x16xbf16>
    %cst_27 = arith.constant dense<0.000000e+00> : vector<16x16xf32>
    %64 = tpu.matmul %62, %63, %cst_27 {dimension_numbers = #tpu.dot_dimension_numbers<[1], [1], [0], [0], [0, 0, 1, 0], [], []>} : vector<16x16xbf16>, vector<16x16xbf16>, vector<16x16xf32> -> vector<16x16xf32>
    %cst_28 = arith.constant 2.500000e-01 : f32
    %65 = vector.broadcast %cst_28 : f32 to vector<16x16xf32>
    %66 = arith.mulf %64, %65 : vector<16x16xf32>
    %67 = arith.addf %66, %23 : vector<16x16xf32>
    %cst_29 = arith.constant dense<0xFF800000> : vector<16xf32>
    %68 = vector.multi_reduction <maximumf>, %67, %cst_29 [1] : vector<16x16xf32> to vector<16xf32>
    %69 = vector.shape_cast %68 : vector<16xf32> to vector<16x1xf32>
    %70 = vector.broadcast %69 : vector<16x1xf32> to vector<16x16xf32>
    %71 = arith.subf %67, %70 : vector<16x16xf32>
    %72 = math.exp %71 : vector<16x16xf32>
    %cst_30 = arith.constant dense<0.000000e+00> : vector<16xf32>
    %73 = vector.multi_reduction <add>, %72, %cst_30 [1] : vector<16x16xf32> to vector<16xf32>
    %74 = vector.shape_cast %73 : vector<16xf32> to vector<16x1xf32>
    %75 = tpu.reciprocal %74 {approx = true} : vector<16x1xf32> -> vector<16x1xf32>
    %76 = vector.broadcast %75 : vector<16x1xf32> to vector<16x16xf32>
    %77 = arith.mulf %72, %76 : vector<16x16xf32>
    %78 = arith.truncf %77 : vector<16x16xf32> to vector<16x16xbf16>
    %79 = arith.truncf %61 : vector<16x16xf32> to vector<16x16xbf16>
    %cst_31 = arith.constant dense<0.000000e+00> : vector<16x16xf32>
    %80 = tpu.matmul %78, %79, %cst_31 {dimension_numbers = #tpu.dot_dimension_numbers<[1], [0], [0], [1], [0, 0, 1, 1], [], []>} : vector<16x16xbf16>, vector<16x16xbf16>, vector<16x16xf32> -> vector<16x16xf32>
    %81 = vector.extract_strided_slice %33 {offsets = [16, 0], sizes = [16, 32], strides = [1, 1]} : vector<32x32xbf16> to vector<16x32xbf16>
    %82 = arith.truncf %80 : vector<16x16xf32> to vector<16x16xbf16>
    %cst_32 = arith.constant dense<0.000000e+00> : vector<16x32xf32>
    %83 = tpu.matmul %82, %81, %cst_32 {dimension_numbers = #tpu.dot_dimension_numbers<[1], [0], [0], [1], [0, 0, 1, 1], [], []>} : vector<16x16xbf16>, vector<16x32xbf16>, vector<16x32xf32> -> vector<16x32xf32>
    %cst_33 = arith.constant 0.000000e+00 : f32
    %84 = vector.broadcast %cst_33 : f32 to vector<16x32xf32>
    %85 = arith.addf %84, %58 : vector<16x32xf32>
    %86 = arith.addf %85, %83 : vector<16x32xf32>
    %c0_34 = arith.constant 0 : index
    %c0_35 = arith.constant 0 : index
    %c0_36 = arith.constant 0 : index
    %87 = vector.load %arg8[%c0_34, %c0_35, %c0_36] : memref<2x1x32xf32, #tpu.memory_space<vmem>>, vector<1x1x32xf32>
    %88 = vector.shape_cast %87 : vector<1x1x32xf32> to vector<1x32xf32>
    %89 = vector.broadcast %88 : vector<1x32xf32> to vector<16x32xf32>
    %90 = arith.addf %86, %89 : vector<16x32xf32>
    %91 = arith.addf %90, %22 : vector<16x32xf32>
    %c0_37 = arith.constant 0 : index
    %c0_38 = arith.constant 0 : index
    %c0_39 = arith.constant 0 : index
    %92 = vector.load %arg9[%c0_37, %c0_38, %c0_39] : memref<2x1x32xf32, #tpu.memory_space<vmem>>, vector<1x1x32xf32>
    %93 = vector.shape_cast %92 : vector<1x1x32xf32> to vector<1x32xf32>
    %c0_40 = arith.constant 0 : index
    %c0_41 = arith.constant 0 : index
    %c0_42 = arith.constant 0 : index
    %94 = vector.load %arg10[%c0_40, %c0_41, %c0_42] : memref<2x1x32xf32, #tpu.memory_space<vmem>>, vector<1x1x32xf32>
    %95 = vector.shape_cast %94 : vector<1x1x32xf32> to vector<1x32xf32>
    %cst_43 = arith.constant dense<0.000000e+00> : vector<16xf32>
    %96 = vector.multi_reduction <add>, %91, %cst_43 [1] : vector<16x32xf32> to vector<16xf32>
    %97 = vector.shape_cast %96 : vector<16xf32> to vector<16x1xf32>
    %cst_44 = arith.constant 3.200000e+01 : f32
    %98 = vector.broadcast %cst_44 : f32 to vector<16x1xf32>
    %99 = arith.divf %97, %98 : vector<16x1xf32>
    %100 = vector.broadcast %99 : vector<16x1xf32> to vector<16x32xf32>
    %101 = arith.subf %91, %100 : vector<16x32xf32>
    %102 = arith.mulf %101, %101 : vector<16x32xf32>
    %cst_45 = arith.constant dense<0.000000e+00> : vector<16xf32>
    %103 = vector.multi_reduction <add>, %102, %cst_45 [1] : vector<16x32xf32> to vector<16xf32>
    %104 = vector.shape_cast %103 : vector<16xf32> to vector<16x1xf32>
    %cst_46 = arith.constant 3.200000e+01 : f32
    %105 = vector.broadcast %cst_46 : f32 to vector<16x1xf32>
    %106 = arith.divf %104, %105 : vector<16x1xf32>
    %cst_47 = arith.constant 9.99999996E-13 : f32
    %107 = vector.broadcast %cst_47 : f32 to vector<16x1xf32>
    %108 = arith.addf %106, %107 : vector<16x1xf32>
    %109 = math.rsqrt %108 : vector<16x1xf32>
    %110 = vector.broadcast %109 : vector<16x1xf32> to vector<16x32xf32>
    %111 = arith.mulf %101, %110 : vector<16x32xf32>
    %112 = vector.broadcast %93 : vector<1x32xf32> to vector<16x32xf32>
    %113 = arith.mulf %111, %112 : vector<16x32xf32>
    %114 = vector.broadcast %95 : vector<1x32xf32> to vector<16x32xf32>
    %115 = arith.addf %113, %114 : vector<16x32xf32>
    %c0_48 = arith.constant 0 : index
    %c0_49 = arith.constant 0 : index
    %c0_50 = arith.constant 0 : index
    %116 = vector.load %arg11[%c0_48, %c0_49, %c0_50] : memref<2x32x64xbf16, #tpu.memory_space<vmem>>, vector<1x32x64xbf16>
    %117 = vector.shape_cast %116 : vector<1x32x64xbf16> to vector<32x64xbf16>
    %118 = arith.truncf %115 : vector<16x32xf32> to vector<16x32xbf16>
    %cst_51 = arith.constant dense<0.000000e+00> : vector<16x64xf32>
    %119 = tpu.matmul %118, %117, %cst_51 {dimension_numbers = #tpu.dot_dimension_numbers<[1], [0], [0], [1], [0, 0, 1, 1], [], []>} : vector<16x32xbf16>, vector<32x64xbf16>, vector<16x64xf32> -> vector<16x64xf32>
    %c0_52 = arith.constant 0 : index
    %c0_53 = arith.constant 0 : index
    %c0_54 = arith.constant 0 : index
    %120 = vector.load %arg12[%c0_52, %c0_53, %c0_54] : memref<2x1x64xf32, #tpu.memory_space<vmem>>, vector<1x1x64xf32>
    %121 = vector.shape_cast %120 : vector<1x1x64xf32> to vector<1x64xf32>
    %122 = vector.broadcast %121 : vector<1x64xf32> to vector<16x64xf32>
    %123 = arith.addf %119, %122 : vector<16x64xf32>
    %cst_55 = arith.constant 5.000000e-01 : f32
    %124 = vector.broadcast %cst_55 : f32 to vector<16x64xf32>
    %125 = arith.mulf %124, %123 : vector<16x64xf32>
    %cst_56 = arith.constant 4.471500e-02 : f32
    %126 = vector.broadcast %cst_56 : f32 to vector<16x64xf32>
    %127 = arith.mulf %126, %123 : vector<16x64xf32>
    %128 = arith.mulf %127, %123 : vector<16x64xf32>
    %129 = arith.mulf %128, %123 : vector<16x64xf32>
    %130 = arith.addf %123, %129 : vector<16x64xf32>
    %cst_57 = arith.constant 0.797884583 : f32
    %131 = vector.broadcast %cst_57 : f32 to vector<16x64xf32>
    %132 = arith.mulf %131, %130 : vector<16x64xf32>
    %133 = math.tanh %132 : vector<16x64xf32>
    %cst_58 = arith.constant 1.000000e+00 : f32
    %134 = vector.broadcast %cst_58 : f32 to vector<16x64xf32>
    %135 = arith.addf %134, %133 : vector<16x64xf32>
    %136 = arith.mulf %125, %135 : vector<16x64xf32>
    %c0_59 = arith.constant 0 : index
    %c0_60 = arith.constant 0 : index
    %c0_61 = arith.constant 0 : index
    %137 = vector.load %arg13[%c0_59, %c0_60, %c0_61] : memref<2x64x32xbf16, #tpu.memory_space<vmem>>, vector<1x64x32xbf16>
    %138 = vector.shape_cast %137 : vector<1x64x32xbf16> to vector<64x32xbf16>
    %139 = arith.truncf %136 : vector<16x64xf32> to vector<16x64xbf16>
    %cst_62 = arith.constant dense<0.000000e+00> : vector<16x32xf32>
    %140 = tpu.matmul %139, %138, %cst_62 {dimension_numbers = #tpu.dot_dimension_numbers<[1], [0], [0], [1], [0, 0, 1, 1], [], []>} : vector<16x64xbf16>, vector<64x32xbf16>, vector<16x32xf32> -> vector<16x32xf32>
    %c0_63 = arith.constant 0 : index
    %c0_64 = arith.constant 0 : index
    %c0_65 = arith.constant 0 : index
    %141 = vector.load %arg14[%c0_63, %c0_64, %c0_65] : memref<2x1x32xf32, #tpu.memory_space<vmem>>, vector<1x1x32xf32>
    %142 = vector.shape_cast %141 : vector<1x1x32xf32> to vector<1x32xf32>
    %143 = vector.broadcast %142 : vector<1x32xf32> to vector<16x32xf32>
    %144 = arith.addf %140, %143 : vector<16x32xf32>
    %145 = arith.addf %144, %115 : vector<16x32xf32>
    %c0_66 = arith.constant 0 : index
    %c0_67 = arith.constant 0 : index
    %c0_68 = arith.constant 0 : index
    %146 = vector.load %arg15[%c0_66, %c0_67, %c0_68] : memref<2x1x32xf32, #tpu.memory_space<vmem>>, vector<1x1x32xf32>
    %147 = vector.shape_cast %146 : vector<1x1x32xf32> to vector<1x32xf32>
    %c0_69 = arith.constant 0 : index
    %c0_70 = arith.constant 0 : index
    %c0_71 = arith.constant 0 : index
    %148 = vector.load %arg16[%c0_69, %c0_70, %c0_71] : memref<2x1x32xf32, #tpu.memory_space<vmem>>, vector<1x1x32xf32>
    %149 = vector.shape_cast %148 : vector<1x1x32xf32> to vector<1x32xf32>
    %cst_72 = arith.constant dense<0.000000e+00> : vector<16xf32>
    %150 = vector.multi_reduction <add>, %145, %cst_72 [1] : vector<16x32xf32> to vector<16xf32>
    %151 = vector.shape_cast %150 : vector<16xf32> to vector<16x1xf32>
    %cst_73 = arith.constant 3.200000e+01 : f32
    %152 = vector.broadcast %cst_73 : f32 to vector<16x1xf32>
    %153 = arith.divf %151, %152 : vector<16x1xf32>
    %154 = vector.broadcast %153 : vector<16x1xf32> to vector<16x32xf32>
    %155 = arith.subf %145, %154 : vector<16x32xf32>
    %156 = arith.mulf %155, %155 : vector<16x32xf32>
    %cst_74 = arith.constant dense<0.000000e+00> : vector<16xf32>
    %157 = vector.multi_reduction <add>, %156, %cst_74 [1] : vector<16x32xf32> to vector<16xf32>
    %158 = vector.shape_cast %157 : vector<16xf32> to vector<16x1xf32>
    %cst_75 = arith.constant 3.200000e+01 : f32
    %159 = vector.broadcast %cst_75 : f32 to vector<16x1xf32>
    %160 = arith.divf %158, %159 : vector<16x1xf32>
    %cst_76 = arith.constant 9.99999996E-13 : f32
    %161 = vector.broadcast %cst_76 : f32 to vector<16x1xf32>
    %162 = arith.addf %160, %161 : vector<16x1xf32>
    %163 = math.rsqrt %162 : vector<16x1xf32>
    %164 = vector.broadcast %163 : vector<16x1xf32> to vector<16x32xf32>
    %165 = arith.mulf %155, %164 : vector<16x32xf32>
    %166 = vector.broadcast %147 : vector<1x32xf32> to vector<16x32xf32>
    %167 = arith.mulf %165, %166 : vector<16x32xf32>
    %168 = vector.broadcast %149 : vector<1x32xf32> to vector<16x32xf32>
    %169 = arith.addf %167, %168 : vector<16x32xf32>
    %c1 = arith.constant 1 : index
    %c0_77 = arith.constant 0 : index
    %c0_78 = arith.constant 0 : index
    %170 = vector.load %arg5[%c1, %c0_77, %c0_78] : memref<2x32x96xbf16, #tpu.memory_space<vmem>>, vector<1x32x96xbf16>
    %171 = vector.shape_cast %170 : vector<1x32x96xbf16> to vector<32x96xbf16>
    %172 = arith.truncf %169 : vector<16x32xf32> to vector<16x32xbf16>
    %cst_79 = arith.constant dense<0.000000e+00> : vector<16x96xf32>
    %173 = tpu.matmul %172, %171, %cst_79 {dimension_numbers = #tpu.dot_dimension_numbers<[1], [0], [0], [1], [0, 0, 1, 1], [], []>} : vector<16x32xbf16>, vector<32x96xbf16>, vector<16x96xf32> -> vector<16x96xf32>
    %c1_80 = arith.constant 1 : index
    %c0_81 = arith.constant 0 : index
    %c0_82 = arith.constant 0 : index
    %174 = vector.load %arg6[%c1_80, %c0_81, %c0_82] : memref<2x1x96xf32, #tpu.memory_space<vmem>>, vector<1x1x96xf32>
    %175 = vector.shape_cast %174 : vector<1x1x96xf32> to vector<1x96xf32>
    %176 = vector.broadcast %175 : vector<1x96xf32> to vector<16x96xf32>
    %177 = arith.addf %173, %176 : vector<16x96xf32>
    %c1_83 = arith.constant 1 : index
    %c0_84 = arith.constant 0 : index
    %c0_85 = arith.constant 0 : index
    %178 = vector.load %arg7[%c1_83, %c0_84, %c0_85] : memref<2x32x32xbf16, #tpu.memory_space<vmem>>, vector<1x32x32xbf16>
    %179 = vector.shape_cast %178 : vector<1x32x32xbf16> to vector<32x32xbf16>
    %180 = vector.extract_strided_slice %177 {offsets = [0, 0], sizes = [16, 16], strides = [1, 1]} : vector<16x96xf32> to vector<16x16xf32>
    %181 = vector.extract_strided_slice %177 {offsets = [0, 32], sizes = [16, 16], strides = [1, 1]} : vector<16x96xf32> to vector<16x16xf32>
    %182 = vector.extract_strided_slice %177 {offsets = [0, 64], sizes = [16, 16], strides = [1, 1]} : vector<16x96xf32> to vector<16x16xf32>
    %183 = arith.truncf %180 : vector<16x16xf32> to vector<16x16xbf16>
    %184 = arith.truncf %181 : vector<16x16xf32> to vector<16x16xbf16>
    %cst_86 = arith.constant dense<0.000000e+00> : vector<16x16xf32>
    %185 = tpu.matmul %183, %184, %cst_86 {dimension_numbers = #tpu.dot_dimension_numbers<[1], [1], [0], [0], [0, 0, 1, 0], [], []>} : vector<16x16xbf16>, vector<16x16xbf16>, vector<16x16xf32> -> vector<16x16xf32>
    %cst_87 = arith.constant 2.500000e-01 : f32
    %186 = vector.broadcast %cst_87 : f32 to vector<16x16xf32>
    %187 = arith.mulf %185, %186 : vector<16x16xf32>
    %188 = arith.addf %187, %23 : vector<16x16xf32>
    %cst_88 = arith.constant dense<0xFF800000> : vector<16xf32>
    %189 = vector.multi_reduction <maximumf>, %188, %cst_88 [1] : vector<16x16xf32> to vector<16xf32>
    %190 = vector.shape_cast %189 : vector<16xf32> to vector<16x1xf32>
    %191 = vector.broadcast %190 : vector<16x1xf32> to vector<16x16xf32>
    %192 = arith.subf %188, %191 : vector<16x16xf32>
    %193 = math.exp %192 : vector<16x16xf32>
    %cst_89 = arith.constant dense<0.000000e+00> : vector<16xf32>
    %194 = vector.multi_reduction <add>, %193, %cst_89 [1] : vector<16x16xf32> to vector<16xf32>
    %195 = vector.shape_cast %194 : vector<16xf32> to vector<16x1xf32>
    %196 = tpu.reciprocal %195 {approx = true} : vector<16x1xf32> -> vector<16x1xf32>
    %197 = vector.broadcast %196 : vector<16x1xf32> to vector<16x16xf32>
    %198 = arith.mulf %193, %197 : vector<16x16xf32>
    %199 = arith.truncf %198 : vector<16x16xf32> to vector<16x16xbf16>
    %200 = arith.truncf %182 : vector<16x16xf32> to vector<16x16xbf16>
    %cst_90 = arith.constant dense<0.000000e+00> : vector<16x16xf32>
    %201 = tpu.matmul %199, %200, %cst_90 {dimension_numbers = #tpu.dot_dimension_numbers<[1], [0], [0], [1], [0, 0, 1, 1], [], []>} : vector<16x16xbf16>, vector<16x16xbf16>, vector<16x16xf32> -> vector<16x16xf32>
    %202 = vector.extract_strided_slice %179 {offsets = [0, 0], sizes = [16, 32], strides = [1, 1]} : vector<32x32xbf16> to vector<16x32xbf16>
    %203 = arith.truncf %201 : vector<16x16xf32> to vector<16x16xbf16>
    %cst_91 = arith.constant dense<0.000000e+00> : vector<16x32xf32>
    %204 = tpu.matmul %203, %202, %cst_91 {dimension_numbers = #tpu.dot_dimension_numbers<[1], [0], [0], [1], [0, 0, 1, 1], [], []>} : vector<16x16xbf16>, vector<16x32xbf16>, vector<16x32xf32> -> vector<16x32xf32>
    %205 = vector.extract_strided_slice %177 {offsets = [0, 16], sizes = [16, 16], strides = [1, 1]} : vector<16x96xf32> to vector<16x16xf32>
    %206 = vector.extract_strided_slice %177 {offsets = [0, 48], sizes = [16, 16], strides = [1, 1]} : vector<16x96xf32> to vector<16x16xf32>
    %207 = vector.extract_strided_slice %177 {offsets = [0, 80], sizes = [16, 16], strides = [1, 1]} : vector<16x96xf32> to vector<16x16xf32>
    %208 = arith.truncf %205 : vector<16x16xf32> to vector<16x16xbf16>
    %209 = arith.truncf %206 : vector<16x16xf32> to vector<16x16xbf16>
    %cst_92 = arith.constant dense<0.000000e+00> : vector<16x16xf32>
    %210 = tpu.matmul %208, %209, %cst_92 {dimension_numbers = #tpu.dot_dimension_numbers<[1], [1], [0], [0], [0, 0, 1, 0], [], []>} : vector<16x16xbf16>, vector<16x16xbf16>, vector<16x16xf32> -> vector<16x16xf32>
    %cst_93 = arith.constant 2.500000e-01 : f32
    %211 = vector.broadcast %cst_93 : f32 to vector<16x16xf32>
    %212 = arith.mulf %210, %211 : vector<16x16xf32>
    %213 = arith.addf %212, %23 : vector<16x16xf32>
    %cst_94 = arith.constant dense<0xFF800000> : vector<16xf32>
    %214 = vector.multi_reduction <maximumf>, %213, %cst_94 [1] : vector<16x16xf32> to vector<16xf32>
    %215 = vector.shape_cast %214 : vector<16xf32> to vector<16x1xf32>
    %216 = vector.broadcast %215 : vector<16x1xf32> to vector<16x16xf32>
    %217 = arith.subf %213, %216 : vector<16x16xf32>
    %218 = math.exp %217 : vector<16x16xf32>
    %cst_95 = arith.constant dense<0.000000e+00> : vector<16xf32>
    %219 = vector.multi_reduction <add>, %218, %cst_95 [1] : vector<16x16xf32> to vector<16xf32>
    %220 = vector.shape_cast %219 : vector<16xf32> to vector<16x1xf32>
    %221 = tpu.reciprocal %220 {approx = true} : vector<16x1xf32> -> vector<16x1xf32>
    %222 = vector.broadcast %221 : vector<16x1xf32> to vector<16x16xf32>
    %223 = arith.mulf %218, %222 : vector<16x16xf32>
    %224 = arith.truncf %223 : vector<16x16xf32> to vector<16x16xbf16>
    %225 = arith.truncf %207 : vector<16x16xf32> to vector<16x16xbf16>
    %cst_96 = arith.constant dense<0.000000e+00> : vector<16x16xf32>
    %226 = tpu.matmul %224, %225, %cst_96 {dimension_numbers = #tpu.dot_dimension_numbers<[1], [0], [0], [1], [0, 0, 1, 1], [], []>} : vector<16x16xbf16>, vector<16x16xbf16>, vector<16x16xf32> -> vector<16x16xf32>
    %227 = vector.extract_strided_slice %179 {offsets = [16, 0], sizes = [16, 32], strides = [1, 1]} : vector<32x32xbf16> to vector<16x32xbf16>
    %228 = arith.truncf %226 : vector<16x16xf32> to vector<16x16xbf16>
    %cst_97 = arith.constant dense<0.000000e+00> : vector<16x32xf32>
    %229 = tpu.matmul %228, %227, %cst_97 {dimension_numbers = #tpu.dot_dimension_numbers<[1], [0], [0], [1], [0, 0, 1, 1], [], []>} : vector<16x16xbf16>, vector<16x32xbf16>, vector<16x32xf32> -> vector<16x32xf32>
    %cst_98 = arith.constant 0.000000e+00 : f32
    %230 = vector.broadcast %cst_98 : f32 to vector<16x32xf32>
    %231 = arith.addf %230, %204 : vector<16x32xf32>
    %232 = arith.addf %231, %229 : vector<16x32xf32>
    %c1_99 = arith.constant 1 : index
    %c0_100 = arith.constant 0 : index
    %c0_101 = arith.constant 0 : index
    %233 = vector.load %arg8[%c1_99, %c0_100, %c0_101] : memref<2x1x32xf32, #tpu.memory_space<vmem>>, vector<1x1x32xf32>
    %234 = vector.shape_cast %233 : vector<1x1x32xf32> to vector<1x32xf32>
    %235 = vector.broadcast %234 : vector<1x32xf32> to vector<16x32xf32>
    %236 = arith.addf %232, %235 : vector<16x32xf32>
    %237 = arith.addf %236, %169 : vector<16x32xf32>
    %c1_102 = arith.constant 1 : index
    %c0_103 = arith.constant 0 : index
    %c0_104 = arith.constant 0 : index
    %238 = vector.load %arg9[%c1_102, %c0_103, %c0_104] : memref<2x1x32xf32, #tpu.memory_space<vmem>>, vector<1x1x32xf32>
    %239 = vector.shape_cast %238 : vector<1x1x32xf32> to vector<1x32xf32>
    %c1_105 = arith.constant 1 : index
    %c0_106 = arith.constant 0 : index
    %c0_107 = arith.constant 0 : index
    %240 = vector.load %arg10[%c1_105, %c0_106, %c0_107] : memref<2x1x32xf32, #tpu.memory_space<vmem>>, vector<1x1x32xf32>
    %241 = vector.shape_cast %240 : vector<1x1x32xf32> to vector<1x32xf32>
    %cst_108 = arith.constant dense<0.000000e+00> : vector<16xf32>
    %242 = vector.multi_reduction <add>, %237, %cst_108 [1] : vector<16x32xf32> to vector<16xf32>
    %243 = vector.shape_cast %242 : vector<16xf32> to vector<16x1xf32>
    %cst_109 = arith.constant 3.200000e+01 : f32
    %244 = vector.broadcast %cst_109 : f32 to vector<16x1xf32>
    %245 = arith.divf %243, %244 : vector<16x1xf32>
    %246 = vector.broadcast %245 : vector<16x1xf32> to vector<16x32xf32>
    %247 = arith.subf %237, %246 : vector<16x32xf32>
    %248 = arith.mulf %247, %247 : vector<16x32xf32>
    %cst_110 = arith.constant dense<0.000000e+00> : vector<16xf32>
    %249 = vector.multi_reduction <add>, %248, %cst_110 [1] : vector<16x32xf32> to vector<16xf32>
    %250 = vector.shape_cast %249 : vector<16xf32> to vector<16x1xf32>
    %cst_111 = arith.constant 3.200000e+01 : f32
    %251 = vector.broadcast %cst_111 : f32 to vector<16x1xf32>
    %252 = arith.divf %250, %251 : vector<16x1xf32>
    %cst_112 = arith.constant 9.99999996E-13 : f32
    %253 = vector.broadcast %cst_112 : f32 to vector<16x1xf32>
    %254 = arith.addf %252, %253 : vector<16x1xf32>
    %255 = math.rsqrt %254 : vector<16x1xf32>
    %256 = vector.broadcast %255 : vector<16x1xf32> to vector<16x32xf32>
    %257 = arith.mulf %247, %256 : vector<16x32xf32>
    %258 = vector.broadcast %239 : vector<1x32xf32> to vector<16x32xf32>
    %259 = arith.mulf %257, %258 : vector<16x32xf32>
    %260 = vector.broadcast %241 : vector<1x32xf32> to vector<16x32xf32>
    %261 = arith.addf %259, %260 : vector<16x32xf32>
    %c1_113 = arith.constant 1 : index
    %c0_114 = arith.constant 0 : index
    %c0_115 = arith.constant 0 : index
    %262 = vector.load %arg11[%c1_113, %c0_114, %c0_115] : memref<2x32x64xbf16, #tpu.memory_space<vmem>>, vector<1x32x64xbf16>
    %263 = vector.shape_cast %262 : vector<1x32x64xbf16> to vector<32x64xbf16>
    %264 = arith.truncf %261 : vector<16x32xf32> to vector<16x32xbf16>
    %cst_116 = arith.constant dense<0.000000e+00> : vector<16x64xf32>
    %265 = tpu.matmul %264, %263, %cst_116 {dimension_numbers = #tpu.dot_dimension_numbers<[1], [0], [0], [1], [0, 0, 1, 1], [], []>} : vector<16x32xbf16>, vector<32x64xbf16>, vector<16x64xf32> -> vector<16x64xf32>
    %c1_117 = arith.constant 1 : index
    %c0_118 = arith.constant 0 : index
    %c0_119 = arith.constant 0 : index
    %266 = vector.load %arg12[%c1_117, %c0_118, %c0_119] : memref<2x1x64xf32, #tpu.memory_space<vmem>>, vector<1x1x64xf32>
    %267 = vector.shape_cast %266 : vector<1x1x64xf32> to vector<1x64xf32>
    %268 = vector.broadcast %267 : vector<1x64xf32> to vector<16x64xf32>
    %269 = arith.addf %265, %268 : vector<16x64xf32>
    %cst_120 = arith.constant 5.000000e-01 : f32
    %270 = vector.broadcast %cst_120 : f32 to vector<16x64xf32>
    %271 = arith.mulf %270, %269 : vector<16x64xf32>
    %cst_121 = arith.constant 4.471500e-02 : f32
    %272 = vector.broadcast %cst_121 : f32 to vector<16x64xf32>
    %273 = arith.mulf %272, %269 : vector<16x64xf32>
    %274 = arith.mulf %273, %269 : vector<16x64xf32>
    %275 = arith.mulf %274, %269 : vector<16x64xf32>
    %276 = arith.addf %269, %275 : vector<16x64xf32>
    %cst_122 = arith.constant 0.797884583 : f32
    %277 = vector.broadcast %cst_122 : f32 to vector<16x64xf32>
    %278 = arith.mulf %277, %276 : vector<16x64xf32>
    %279 = math.tanh %278 : vector<16x64xf32>
    %cst_123 = arith.constant 1.000000e+00 : f32
    %280 = vector.broadcast %cst_123 : f32 to vector<16x64xf32>
    %281 = arith.addf %280, %279 : vector<16x64xf32>
    %282 = arith.mulf %271, %281 : vector<16x64xf32>
    %c1_124 = arith.constant 1 : index
    %c0_125 = arith.constant 0 : index
    %c0_126 = arith.constant 0 : index
    %283 = vector.load %arg13[%c1_124, %c0_125, %c0_126] : memref<2x64x32xbf16, #tpu.memory_space<vmem>>, vector<1x64x32xbf16>
    %284 = vector.shape_cast %283 : vector<1x64x32xbf16> to vector<64x32xbf16>
    %285 = arith.truncf %282 : vector<16x64xf32> to vector<16x64xbf16>
    %cst_127 = arith.constant dense<0.000000e+00> : vector<16x32xf32>
    %286 = tpu.matmul %285, %284, %cst_127 {dimension_numbers = #tpu.dot_dimension_numbers<[1], [0], [0], [1], [0, 0, 1, 1], [], []>} : vector<16x64xbf16>, vector<64x32xbf16>, vector<16x32xf32> -> vector<16x32xf32>
    %c1_128 = arith.constant 1 : index
    %c0_129 = arith.constant 0 : index
    %c0_130 = arith.constant 0 : index
    %287 = vector.load %arg14[%c1_128, %c0_129, %c0_130] : memref<2x1x32xf32, #tpu.memory_space<vmem>>, vector<1x1x32xf32>
    %288 = vector.shape_cast %287 : vector<1x1x32xf32> to vector<1x32xf32>
    %289 = vector.broadcast %288 : vector<1x32xf32> to vector<16x32xf32>
    %290 = arith.addf %286, %289 : vector<16x32xf32>
    %291 = arith.addf %290, %261 : vector<16x32xf32>
    %c1_131 = arith.constant 1 : index
    %c0_132 = arith.constant 0 : index
    %c0_133 = arith.constant 0 : index
    %292 = vector.load %arg15[%c1_131, %c0_132, %c0_133] : memref<2x1x32xf32, #tpu.memory_space<vmem>>, vector<1x1x32xf32>
    %293 = vector.shape_cast %292 : vector<1x1x32xf32> to vector<1x32xf32>
    %c1_134 = arith.constant 1 : index
    %c0_135 = arith.constant 0 : index
    %c0_136 = arith.constant 0 : index
    %294 = vector.load %arg16[%c1_134, %c0_135, %c0_136] : memref<2x1x32xf32, #tpu.memory_space<vmem>>, vector<1x1x32xf32>
    %295 = vector.shape_cast %294 : vector<1x1x32xf32> to vector<1x32xf32>
    %cst_137 = arith.constant dense<0.000000e+00> : vector<16xf32>
    %296 = vector.multi_reduction <add>, %291, %cst_137 [1] : vector<16x32xf32> to vector<16xf32>
    %297 = vector.shape_cast %296 : vector<16xf32> to vector<16x1xf32>
    %cst_138 = arith.constant 3.200000e+01 : f32
    %298 = vector.broadcast %cst_138 : f32 to vector<16x1xf32>
    %299 = arith.divf %297, %298 : vector<16x1xf32>
    %300 = vector.broadcast %299 : vector<16x1xf32> to vector<16x32xf32>
    %301 = arith.subf %291, %300 : vector<16x32xf32>
    %302 = arith.mulf %301, %301 : vector<16x32xf32>
    %cst_139 = arith.constant dense<0.000000e+00> : vector<16xf32>
    %303 = vector.multi_reduction <add>, %302, %cst_139 [1] : vector<16x32xf32> to vector<16xf32>
    %304 = vector.shape_cast %303 : vector<16xf32> to vector<16x1xf32>
    %cst_140 = arith.constant 3.200000e+01 : f32
    %305 = vector.broadcast %cst_140 : f32 to vector<16x1xf32>
    %306 = arith.divf %304, %305 : vector<16x1xf32>
    %cst_141 = arith.constant 9.99999996E-13 : f32
    %307 = vector.broadcast %cst_141 : f32 to vector<16x1xf32>
    %308 = arith.addf %306, %307 : vector<16x1xf32>
    %309 = math.rsqrt %308 : vector<16x1xf32>
    %310 = vector.broadcast %309 : vector<16x1xf32> to vector<16x32xf32>
    %311 = arith.mulf %301, %310 : vector<16x32xf32>
    %312 = vector.broadcast %293 : vector<1x32xf32> to vector<16x32xf32>
    %313 = arith.mulf %311, %312 : vector<16x32xf32>
    %314 = vector.broadcast %295 : vector<1x32xf32> to vector<16x32xf32>
    %315 = arith.addf %313, %314 : vector<16x32xf32>
    %c0_142 = arith.constant 0 : index
    %c0_143 = arith.constant 0 : index
    %316 = vector.load %arg17[%c0_142, %c0_143] : memref<32x5xbf16, #tpu.memory_space<vmem>>, vector<32x5xbf16>
    %317 = arith.truncf %315 : vector<16x32xf32> to vector<16x32xbf16>
    %cst_144 = arith.constant dense<0.000000e+00> : vector<16x5xf32>
    %318 = tpu.matmul %317, %316, %cst_144 {dimension_numbers = #tpu.dot_dimension_numbers<[1], [0], [0], [1], [0, 0, 1, 1], [], []>} : vector<16x32xbf16>, vector<32x5xbf16>, vector<16x5xf32> -> vector<16x5xf32>
    %c0_145 = arith.constant 0 : index
    %c0_146 = arith.constant 0 : index
    %319 = vector.load %arg18[%c0_145, %c0_146] : memref<1x5xf32, #tpu.memory_space<vmem>>, vector<1x5xf32>
    %320 = vector.broadcast %319 : vector<1x5xf32> to vector<16x5xf32>
    %321 = arith.addf %318, %320 : vector<16x5xf32>
    %c0_147 = arith.constant 0 : index
    %c0_148 = arith.constant 0 : index
    %322 = vector.load %arg19[%c0_147, %c0_148] : memref<16x1xi32, #tpu.memory_space<vmem>>, vector<16x1xi32>
    %c0_149 = arith.constant 0 : index
    %c0_150 = arith.constant 0 : index
    %323 = vector.load %arg20[%c0_149, %c0_150] : memref<16x1xf32, #tpu.memory_space<vmem>>, vector<16x1xf32>
    %324 = tpu.iota {dimensions = array<i32: 1>} : vector<16x5xi32>
    %325 = vector.broadcast %322 : vector<16x1xi32> to vector<16x5xi32>
    %326 = arith.cmpi eq, %324, %325 : vector<16x5xi32>
    %327 = arith.extui %326 : vector<16x5xi1> to vector<16x5xi32>
    %328 = arith.sitofp %327 : vector<16x5xi32> to vector<16x5xf32>
    %cst_151 = arith.constant dense<0xFF800000> : vector<16xf32>
    %329 = vector.multi_reduction <maximumf>, %321, %cst_151 [1] : vector<16x5xf32> to vector<16xf32>
    %330 = vector.shape_cast %329 : vector<16xf32> to vector<16x1xf32>
    %331 = vector.broadcast %330 : vector<16x1xf32> to vector<16x5xf32>
    %332 = arith.subf %321, %331 : vector<16x5xf32>
    %333 = math.exp %332 : vector<16x5xf32>
    %cst_152 = arith.constant dense<0.000000e+00> : vector<16xf32>
    %334 = vector.multi_reduction <add>, %333, %cst_152 [1] : vector<16x5xf32> to vector<16xf32>
    %335 = vector.shape_cast %334 : vector<16xf32> to vector<16x1xf32>
    %336 = math.log %335 : vector<16x1xf32>
    %337 = arith.addf %330, %336 : vector<16x1xf32>
    %338 = arith.mulf %321, %328 : vector<16x5xf32>
    %cst_153 = arith.constant dense<0.000000e+00> : vector<16xf32>
    %339 = vector.multi_reduction <add>, %338, %cst_153 [1] : vector<16x5xf32> to vector<16xf32>
    %340 = vector.shape_cast %339 : vector<16xf32> to vector<16x1xf32>
    %341 = arith.subf %337, %340 : vector<16x1xf32>
    %342 = arith.mulf %341, %323 : vector<16x1xf32>
    %343 = vector.shape_cast %342 : vector<16x1xf32> to vector<1x16x1xf32>
    %cst_154 = arith.constant dense<0.000000e+00> : vector<1xf32>
    %344 = vector.multi_reduction <add>, %343, %cst_154 [1, 2] : vector<1x16x1xf32> to vector<1xf32>
    %345 = vector.shape_cast %344 : vector<1xf32> to vector<1x1x1xf32>
    %346 = vector.extract %345[0, 0, 0] : f32 from vector<1x1x1xf32>
    %347 = vector.broadcast %346 : f32 to vector<1x1xf32>
    %348 = vector.shape_cast %323 : vector<16x1xf32> to vector<1x16x1xf32>
    %cst_155 = arith.constant dense<0.000000e+00> : vector<1xf32>
    %349 = vector.multi_reduction <add>, %348, %cst_155 [1, 2] : vector<1x16x1xf32> to vector<1xf32>
    %350 = vector.shape_cast %349 : vector<1xf32> to vector<1x1x1xf32>
    %351 = vector.extract %350[0, 0, 0] : f32 from vector<1x1x1xf32>
    %352 = vector.broadcast %351 : f32 to vector<1x1xf32>
    %cst_156 = arith.constant 1.000000e+00 : f32
    %353 = vector.broadcast %cst_156 : f32 to vector<1x1xf32>
    %354 = arith.maximumf %352, %353 : vector<1x1xf32>
    %355 = arith.divf %347, %354 : vector<1x1xf32>
    %c0_157 = arith.constant 0 : index
    %c0_158 = arith.constant 0 : index
    %356 = vector.load %arg21[%c0_157, %c0_158] : memref<1x1xf32, #tpu.memory_space<vmem>>, vector<1x1xf32>
    tpu.vector_store %arg21[%c0_157, %c0_158], %355 {strides = array<i32>} : memref<1x1xf32, #tpu.memory_space<vmem>>, vector<1x1xf32>,
    %357 = vector.broadcast %330 : vector<16x1xf32> to vector<16x5xf32>
    %358 = arith.cmpf oeq, %321, %357 : vector<16x5xf32>
    %c5_i32 = arith.constant 5 : i32
    %359 = vector.broadcast %c5_i32 : i32 to vector<16x5xi32>
    %360 = arith.select %358, %324, %359 : vector<16x5xi1>, vector<16x5xi32>
    %cst_159 = arith.constant dense<2147483647> : vector<16xi32>
    %361 = vector.multi_reduction <minsi>, %360, %cst_159 [1] : vector<16x5xi32> to vector<16xi32>
    %362 = vector.shape_cast %361 : vector<16xi32> to vector<16x1xi32>
    %c0_160 = arith.constant 0 : index
    %c0_161 = arith.constant 0 : index
    %363 = vector.load %arg22[%c0_160, %c0_161] : memref<16x1xi32, #tpu.memory_space<vmem>>, vector<16x1xi32>
    tpu.vector_store %arg22[%c0_160, %c0_161], %362 {strides = array<i32>} : memref<16x1xi32, #tpu.memory_space<vmem>>, vector<16x1xi32>,
    return
  }
  func.func @transform_0(%arg0: i32) -> (i32, i32) {
    %c0_i32 = arith.constant 0 : i32
    %c0_i32_0 = arith.constant 0 : i32
    %c0_i32_1 = arith.constant 0 : i32
    return %c0_i32, %c0_i32_0 : i32, i32
  }
  func.func @transform_1(%arg0: i32) -> (i32, i32) {
    %c0_i32 = arith.constant 0 : i32
    %c0_i32_0 = arith.constant 0 : i32
    %c0_i32_1 = arith.constant 0 : i32
    return %c0_i32, %c0_i32_0 : i32, i32
  }
  func.func @transform_2(%arg0: i32) -> (i32, i32) {
    %c0_i32 = arith.constant 0 : i32
    %c0_i32_0 = arith.constant 0 : i32
    %c0_i32_1 = arith.constant 0 : i32
    return %c0_i32, %c0_i32_0 : i32, i32
  }
  func.func @transform_3(%arg0: i32) -> (i32, i32) {
    %c0_i32 = arith.constant 0 : i32
    %c0_i32_0 = arith.constant 0 : i32
    %c0_i32_1 = arith.constant 0 : i32
    return %c0_i32, %c0_i32_0 : i32, i32
  }
  func.func @transform_4(%arg0: i32) -> (i32, i32, i32) {
    %c0_i32 = arith.constant 0 : i32
    %c0_i32_0 = arith.constant 0 : i32
    %c0_i32_1 = arith.constant 0 : i32
    %c0_i32_2 = arith.constant 0 : i32
    return %c0_i32, %c0_i32_0, %c0_i32_1 : i32, i32, i32
  }
  func.func @transform_5(%arg0: i32) -> (i32, i32, i32) {
    %c0_i32 = arith.constant 0 : i32
    %c0_i32_0 = arith.constant 0 : i32
    %c0_i32_1 = arith.constant 0 : i32
    %c0_i32_2 = arith.constant 0 : i32
    return %c0_i32, %c0_i32_0, %c0_i32_1 : i32, i32, i32
  }
  func.func @transform_6(%arg0: i32) -> (i32, i32, i32) {
    %c0_i32 = arith.constant 0 : i32
    %c0_i32_0 = arith.constant 0 : i32
    %c0_i32_1 = arith.constant 0 : i32
    %c0_i32_2 = arith.constant 0 : i32
    return %c0_i32, %c0_i32_0, %c0_i32_1 : i32, i32, i32
  }
  func.func @transform_7(%arg0: i32) -> (i32, i32, i32) {
    %c0_i32 = arith.constant 0 : i32
    %c0_i32_0 = arith.constant 0 : i32
    %c0_i32_1 = arith.constant 0 : i32
    %c0_i32_2 = arith.constant 0 : i32
    return %c0_i32, %c0_i32_0, %c0_i32_1 : i32, i32, i32
  }
  func.func @transform_8(%arg0: i32) -> (i32, i32, i32) {
    %c0_i32 = arith.constant 0 : i32
    %c0_i32_0 = arith.constant 0 : i32
    %c0_i32_1 = arith.constant 0 : i32
    %c0_i32_2 = arith.constant 0 : i32
    return %c0_i32, %c0_i32_0, %c0_i32_1 : i32, i32, i32
  }
  func.func @transform_9(%arg0: i32) -> (i32, i32, i32) {
    %c0_i32 = arith.constant 0 : i32
    %c0_i32_0 = arith.constant 0 : i32
    %c0_i32_1 = arith.constant 0 : i32
    %c0_i32_2 = arith.constant 0 : i32
    return %c0_i32, %c0_i32_0, %c0_i32_1 : i32, i32, i32
  }
  func.func @transform_10(%arg0: i32) -> (i32, i32, i32) {
    %c0_i32 = arith.constant 0 : i32
    %c0_i32_0 = arith.constant 0 : i32
    %c0_i32_1 = arith.constant 0 : i32
    %c0_i32_2 = arith.constant 0 : i32
    return %c0_i32, %c0_i32_0, %c0_i32_1 : i32, i32, i32
  }
  func.func @transform_11(%arg0: i32) -> (i32, i32, i32) {
    %c0_i32 = arith.constant 0 : i32
    %c0_i32_0 = arith.constant 0 : i32
    %c0_i32_1 = arith.constant 0 : i32
    %c0_i32_2 = arith.constant 0 : i32
    return %c0_i32, %c0_i32_0, %c0_i32_1 : i32, i32, i32
  }
  func.func @transform_12(%arg0: i32) -> (i32, i32, i32) {
    %c0_i32 = arith.constant 0 : i32
    %c0_i32_0 = arith.constant 0 : i32
    %c0_i32_1 = arith.constant 0 : i32
    %c0_i32_2 = arith.constant 0 : i32
    return %c0_i32, %c0_i32_0, %c0_i32_1 : i32, i32, i32
  }
  func.func @transform_13(%arg0: i32) -> (i32, i32, i32) {
    %c0_i32 = arith.constant 0 : i32
    %c0_i32_0 = arith.constant 0 : i32
    %c0_i32_1 = arith.constant 0 : i32
    %c0_i32_2 = arith.constant 0 : i32
    return %c0_i32, %c0_i32_0, %c0_i32_1 : i32, i32, i32
  }
  func.func @transform_14(%arg0: i32) -> (i32, i32, i32) {
    %c0_i32 = arith.constant 0 : i32
    %c0_i32_0 = arith.constant 0 : i32
    %c0_i32_1 = arith.constant 0 : i32
    %c0_i32_2 = arith.constant 0 : i32
    return %c0_i32, %c0_i32_0, %c0_i32_1 : i32, i32, i32
  }
  func.func @transform_15(%arg0: i32) -> (i32, i32, i32) {
    %c0_i32 = arith.constant 0 : i32
    %c0_i32_0 = arith.constant 0 : i32
    %c0_i32_1 = arith.constant 0 : i32
    %c0_i32_2 = arith.constant 0 : i32
    return %c0_i32, %c0_i32_0, %c0_i32_1 : i32, i32, i32
  }
  func.func @transform_16(%arg0: i32) -> (i32, i32) {
    %c0_i32 = arith.constant 0 : i32
    %c0_i32_0 = arith.constant 0 : i32
    %c0_i32_1 = arith.constant 0 : i32
    return %c0_i32, %c0_i32_0 : i32, i32
  }
  func.func @transform_17(%arg0: i32) -> (i32, i32) {
    %c0_i32 = arith.constant 0 : i32
    %c0_i32_0 = arith.constant 0 : i32
    %c0_i32_1 = arith.constant 0 : i32
    return %c0_i32, %c0_i32_0 : i32, i32
  }
  func.func @transform_18(%arg0: i32) -> (i32, i32) {
    %c0_i32 = arith.constant 0 : i32
    %c0_i32_0 = arith.constant 0 : i32
    %c0_i32_1 = arith.constant 0 : i32
    return %c0_i32, %c0_i32_0 : i32, i32
  }
  func.func @transform_19(%arg0: i32) -> (i32, i32) {
    %c0_i32 = arith.constant 0 : i32
    %c0_i32_0 = arith.constant 0 : i32
    %c0_i32_1 = arith.constant 0 : i32
    return %c0_i32, %c0_i32_0 : i32, i32
  }
  func.func @transform_20(%arg0: i32) -> (i32, i32) {
    %c0_i32 = arith.constant 0 : i32
    %c0_i32_0 = arith.constant 0 : i32
    %c0_i32_1 = arith.constant 0 : i32
    return %c0_i32, %c0_i32_0 : i32, i32
  }
  func.func @transform_21(%arg0: i32) -> (i32, i32) {
    %c0_i32 = arith.constant 0 : i32
    %c0_i32_0 = arith.constant 0 : i32
    %c0_i32_1 = arith.constant 0 : i32
    return %c0_i32, %c0_i32_0 : i32, i32
  }
}

</mosaic_0001>

<bundles_post_ra>
// kernel: forward.1
= control target key start
LH: loop header
LB: loop body
LE: loop exit
PB: predicated region body
PF: predicated region fallthrough
CT: control target
= control target key end

     0   :  { %s2625_s0 = inlined_call_operand.vmem [shape: f32[16,32], index: 0, kind: input, shape index: {}]   ;;  %s2626_s1 = inlined_call_operand.vmem [shape: f32[16,16], index: 1, kind: input, shape index: {}]   ;;  %s2627_s2 = inlined_call_operand.vmem [shape: f32[1,32], index: 2, kind: input, shape index: {}]   ;;  %s2628_s3 = inlined_call_operand.vmem [shape: f32[1,32], index: 3, kind: input, shape index: {}]   ;;  %s2629_s4 = inlined_call_operand.vmem [shape: bf16[2,32,96], index: 4, kind: input, shape index: {}]   ;;  %s2630_s5 = inlined_call_operand.vmem [shape: f32[2,1,96], index: 5, kind: input, shape index: {}]   ;;  %s2631_s6 = inlined_call_operand.vmem [shape: bf16[2,32,32], index: 6, kind: input, shape index: {}]   ;;  %s2632_s7 = inlined_call_operand.vmem [shape: f32[2,1,32], index: 7, kind: input, shape index: {}]   ;;  %s2633_s8 = inlined_call_operand.vmem [shape: f32[2,1,32], index: 8, kind: input, shape index: {}]   ;;  %s2634_s9 = inlined_call_operand.vmem [shape: f32[2,1,32], index: 9, kind: input, shape index: {}]   ;;  %s2635_s10 = inlined_call_operand.vmem [shape: bf16[2,32,64], index: 10, kind: input, shape index: {}]   ;;  %s2636_s11 = inlined_call_operand.vmem [shape: f32[2,1,64], index: 11, kind: input, shape index: {}]   ;;  %s2637_s12 = inlined_call_operand.vmem [shape: bf16[2,64,32], index: 12, kind: input, shape index: {}]   ;;  %s2638_s13 = inlined_call_operand.vmem [shape: f32[2,1,32], index: 13, kind: input, shape index: {}]   ;;  %s2639_s14 = inlined_call_operand.vmem [shape: f32[2,1,32], index: 14, kind: input, shape index: {}]   ;;  %s2640_s15 = inlined_call_operand.vmem [shape: f32[2,1,32], index: 15, kind: input, shape index: {}]   ;;  %s2641_s16 = inlined_call_operand.vmem [shape: bf16[32,5], index: 16, kind: input, shape index: {}]   ;;  %s2642_s17 = inlined_call_operand.vmem [shape: f32[1,5], index: 17, kind: input, shape index: {}]   ;;  %s2643_s18 = inlined_call_operand.vmem [shape: s32[16,1], index: 18, kind: input, shape index: {}]   ;;  %s2644_s19 = inlined_call_operand.vmem [shape: f32[16,1], index: 19, kind: input, shape index: {}]   ;;  %s2645_s20 = inlined_call_operand.hbm [shape: f32[1,1], index: 20, kind: output, shape index: {0}]   ;;  %s2646_s21 = inlined_call_operand.vmem [shape: s32[16,1], index: 21, kind: output, shape index: {1}]  }
   0x1   :  { %2651 = sst [smem:[#allocation5_spill]] %s2625_s0 }
   0x2   :  { %2652 = sst [smem:[#allocation6_spill]] %s2626_s1 }
   0x3   :  { %2653 = sst [smem:[#allocation7_spill]] %s2627_s2 }
   0x4   :  { %2654 = sst [smem:[#allocation8_spill]] %s2628_s3 }
   0x5   :  { %2655 = sst [smem:[#allocation9_spill]] %s2629_s4 }
   0x6   :  { %2656 = sst [smem:[#allocation10_spill]] %s2630_s5 }
   0x7   :  { %s2657_s26 = sld [smem:[#allocation5_spill]]  ;;  %vm73_vm0 = vcmask 261120  }
   0xd   :  { %v69_v0 = vld [vmem:[%s2657_s26] sm:$0xff]  ;;  %v70_v1 = vld [vmem:[%s2657_s26 + $0x8] sm:$0xff] }
   0xe   :  { %v74_v2 = vsel %vm73_vm0, %v69_v0, 0.0  ;;  %v77_v3 = vsel %vm73_vm0, %v70_v1, 0.0 }
   0xf   :  { %75 = vadd.xlane.f32.xlu0 %v74_v2 }
  0x13   :  { %78 = vadd.xlane.f32.xlu0 %v77_v3 }
  0x14   :  { %27 = vsyncpa [#allocation3], 0  ;;  %s2658_s0 = sld [smem:[#allocation9_spill]]  ;;  %v2138_v15 = vmov 0.0   ;;  %vm2139_vm1 = vmmov 0   ;;  %s2659_s23 = sld [smem:[#allocation7_spill]] }
  0x15   :  { %1871 = vmatprep.subr.bf16.mxu0 %v2138_v15  ;;  %1879 = vmatprep.subr.bf16.mxu1 %v2138_v15  ;;  %s2660_s2 = sld [smem:[#allocation8_spill]]  ;;  %s2661_s27 = sld [smem:[#allocation10_spill]]  ;;  %vm195_vm2 = vcmask 130048   ;;  %vm725_vm3 = vcmask 523264   ;;  %vm1609_vm4 = vcmask 39936   ;;  %vm1646_vm8 = vcmask 7168  }
  0x16   :  { %1875 = vmatprep.mubr.msk.bf16.mxu0 %vm2139_vm1, %v2138_v15  ;;  %1881 = vmatprep.mubr.msk.bf16.mxu1 %vm2139_vm1, %v2138_v15  ;;  %s2140_s3 = smov 80   ;;  %s2141_s28 = smov 96   ;;  %vm1676_vm12 = vcmask 0  }
  0x17   :  { %s2142_s29 = smov 112   ;;  %s2662_s5 = sld [smem:[#allocation6_spill]] }
  0x18   :  { %s2143_s1 = smov 64   ;;  %s2144_s24 = smov 48  }
  0x19   :  { %s2146_s26 = smov [#allocation2]  }
  0x1a   :  { %v2022_v14 = vld [vmem:[%s2658_s0] sm:$0xff]   ;;  %v2023_v16 = vld [vmem:[%s2658_s0 + $0x8] sm:$0xff]  }
  0x1b   :  { %1872 = vmatpush3.bf16.msra.mxu0 %v2022_v14  ;;  %v1732_v25 = vld [vmem:[%s2659_s23] ss:$0 sm:$0xff] }
  0x1c   :  { %1873 = vmatprep.subr.bf16.mxu0 %v2138_v15  ;;  %v1733_v29 = vld [vmem:[%s2660_s2] ss:$0 sm:$0xff] }
  0x1d   :  { %v1734_v34 = vld [vmem:[%s2661_s27] ss:$0 sm:$0xff]  ;;  %v2326_v52 = vld [vmem:[%s2662_s5 + $0x8] sm:$0xff] }
  0x1e   :  { %v2321_v48 = vld [vmem:[%s2662_s5] sm:$0xff] }
  0x1f   :  { %1874 = vmatpush3.bf16.msra.mxu0 %v2023_v16 }
  0x20   :  { %1885 = vmatprep.subr.bf16.mxu0 %v2138_v15 }
  0x9c   :  { %v76_v4 = vpop.xlane.xlu0 %75 }
  0x9d   :  { %v81_v5 = vmul.f32 0.03125, %v76_v4 }
  0x9f   :  { %v83_v6 = vsub.f32 %v69_v0, %v81_v5 }
  0xa0   :  { %v79_v7 = vpop.xlane.xlu0 %78 }
  0xa1   :  { %v82_v8 = vmul.f32 0.03125, %v79_v7  ;;  %v85_v9 = vmul.f32 %v83_v6, %v83_v6 }
  0xa3   :  { %v84_v10 = vsub.f32 %v70_v1, %v82_v8  ;;  %v87_v11 = vsel %vm73_vm0, %v85_v9, 0.0 }
  0xa4   :  { %88 = vadd.xlane.f32.xlu1 %v87_v11 }
  0xa5   :  { %v86_v12 = vmul.f32 %v84_v10, %v84_v10 }
  0xa7   :  { %v90_v13 = vsel %vm73_vm0, %v86_v12, 0.0 }
  0xa8   :  { %91 = vadd.xlane.f32.xlu1 %v90_v13 }
 0x131   :  { %v89_v17 = vpop.xlane.xlu1 %88 }
 0x132   :  { %v93_v18 = vmul.f32 0.03125, %v89_v17 }
 0x134   :  { %v95_v19 = vadd.f32 1e-12, %v93_v18 }
 0x135   :  { %v92_v20 = vpop.xlane.xlu1 %91 }
 0x136   :  { %2044 = vrsqrt.f32 %v95_v19  ;;  %v94_v21 = vmul.f32 0.03125, %v92_v20 }
 0x138   :  { %v96_v22 = vadd.f32 1e-12, %v94_v21 }
 0x13a   :  { %2046 = vrsqrt.f32 %v96_v22 }
 0x140   :  { %v2045_v23 = vpop.eup %2044 }
 0x141   :  { %v99_v24 = vmul.f32 %v2045_v23, %v83_v6 }
 0x143   :  { %v107_v28 = vmul.f32 %v1732_v25, %v99_v24 }
 0x144   :  { %v2047_v26 = vpop.eup %2046 }
 0x145   :  { %v100_v27 = vmul.f32 %v2047_v26, %v84_v10  ;;  %v2287_v31 = vadd.f32 %v1733_v29, %v107_v28 }
 0x147   :  { %v108_v30 = vmul.f32 %v1732_v25, %v100_v27 }
 0x149   :  { %v2289_v32 = vadd.f32 %v1733_v29, %v108_v30 }
 0x14b   :  { %v123_v33 = vpack.c.bf16 %v2289_v32, %v2287_v31 }
 0x14d   :  { %1876 = vmatmul.mubr.msk.bf16.vlgmr.msra.gmra.mrb[0].mxu0 %vm73_vm0, %v123_v33 }
 0x14e   :  { %1887 = vmatprep.mubr.msk.bf16.mxu0 %vm2139_vm1, %v2138_v15 }
 0x220   :  { %v180_v35 = vpop.f32.mrb[0].mxu0 }
 0x221   :  { %v1877_v36 = vpop.f32.mrb[1].mxu0  ;;  %v181_v38 = vadd.f32 %v1734_v34, %v180_v35 }
 0x222   :  { %v183_v37 = vpop.f32.mrb[2].mxu0 }
 0x223   :  { %v184_v39 = vadd.f32 %v1734_v34, %v183_v37  ;;  %v1878_v40 = vpop.f32.mrb[3].mxu0 }
 0x225   :  { %v2299_v41 = vpack.c.bf16 %v184_v39, %v181_v38 }
 0x227   :  { %320 = vrot.lane.b32.xlu1 %v2299_v41, %s2140_s3  ;;  %193 = vrot.lane.b32.xlu0 %v2299_v41, %s2141_s28 }
 0x22b   :  { %318 = vrot.lane.b32.xlu1 %v2299_v41, %s2142_s29 }
 0x299   :  { %v194_v42 = vpop.permute.xlu0 %193  ;;  %v321_v44 = vpop.permute.xlu1 %320 }
 0x29a   :  { %v200_v43 = vsel %vm195_vm2, %v194_v42, 0  ;;  %v326_v45 = vsel %vm195_vm2, %v321_v44, 0  ;;  %v2024_v44 = vld [vmem:[%s2631_s6] sm:$0xff]  }
 0x29b   :  { %1880 = vmatpush3.bf16.xpose.msra.mxu1 %v200_v43 }
 0x29c   :  { %1891 = vmatprep.subr.bf16.mxu1 %v2138_v15 }
 0x29d   :  { %v319_v46 = vpop.permute.xlu1 %318 }
 0x2a2   :  { %1882 = vmatmul.mubr.msk.bf16.vlgmr.msra.gmra.mrb[0].mxu1 %vm195_vm2, %v2299_v41 }
 0x2a3   :  { %1892 = vmatpush3.bf16.xpose.msra.mxu1 %v326_v45  ;;  %1893 = vmatprep.mubr.msk.bf16.mxu1 %vm2139_vm1, %v2138_v15  ;;  %v2025_v45 = vld [vmem:[%s2631_s6 + $0x8] sm:$0xff]  }
 0x2a4   :  { %1903 = vmatprep.subr.bf16.mxu1 %v2138_v15 }
 0x2aa   :  { %1894 = vmatmul.mubr.msk.bf16.vlgmr.msra.gmra.mrb[4].mxu1 %vm195_vm2, %v319_v46 }
 0x2ab   :  { %1905 = vmatprep.mubr.msk.bf16.mxu1 %vm2139_vm1, %v2138_v15  ;;  %1904 = vmatpush3.bf16.msra.mxu1 %v2025_v45  ;;  %v1749_v45 = vld [vmem:[%s2636_s11] ss:$0 sm:$0xff] }
 0x2ac   :  { %1915 = vmatprep.subr.bf16.mxu1 %v2138_v15 }
 0x375   :  { %v236_v47 = vpop.f32.mrb[0].mxu1 }
 0x376   :  { %v243_v49 = vmul.f32 0.25, %v236_v47  ;;  %v1883_v50 = vpop.f32.mrb[1].mxu1 }
 0x377   :  { %v239_v51 = vpop.f32.mrb[2].mxu1 }
 0x378   :  { %v244_v53 = vmul.f32 0.25, %v239_v51  ;;  %v1884_v54 = vpop.f32.mrb[3].mxu1  ;;  %v245_v55 = vadd.f32 %v243_v49, %v2321_v48 }
 0x37a   :  { %v247_v56 = vsel %vm195_vm2, %v245_v55, -inf  ;;  %v246_v57 = vadd.f32 %v244_v53, %v2326_v52 }
 0x37b   :  { %248 = vmax.xlane.f32.xlu1 %v247_v56 }
 0x37c   :  { %v250_v58 = vsel %vm195_vm2, %v246_v57, -inf }
 0x37d   :  { %251 = vmax.xlane.f32.xlu0 %v250_v58  ;;  %v362_v59 = vpop.f32.mrb[4].mxu1 }
 0x37e   :  { %v369_v60 = vmul.f32 0.25, %v362_v59  ;;  %v1895_v61 = vpop.f32.mrb[5].mxu1 }
 0x37f   :  { %v365_v62 = vpop.f32.mrb[6].mxu1 }
 0x380   :  { %v370_v63 = vmul.f32 0.25, %v365_v62  ;;  %v1896_v0 = vpop.f32.mrb[7].mxu1  ;;  %v371_v1 = vadd.f32 %v369_v60, %v2321_v48 }
 0x382   :  { %v373_v2 = vsel %vm195_vm2, %v371_v1, -inf  ;;  %v372_v3 = vadd.f32 %v370_v63, %v2326_v52  ;;  %v1746_v63 = vld [vmem:[%s2632_s7] ss:$0 sm:$0xff] }
 0x383   :  { %374 = vmax.xlane.f32.xlu0 %v373_v2 }
 0x384   :  { %v376_v4 = vsel %vm195_vm2, %v372_v3, -inf }
 0x387   :  { %377 = vmax.xlane.f32.xlu0 %v376_v4 }
 0x408   :  { %v249_v5 = vpop.xlane.xlu1 %248 }
 0x409   :  { %v253_v6 = vsub.f32 %v245_v55, %v249_v5 }
 0x40a   :  { %v252_v7 = vpop.xlane.xlu0 %251 }
 0x40b   :  { %v255_v8 = vmul.f32 1.442695, %v253_v6  ;;  %v254_v9 = vsub.f32 %v246_v57, %v252_v7 }
 0x40d   :  { %2048 = vpow2.f32 %v255_v8  ;;  %v257_v10 = vmul.f32 1.442695, %v254_v9 }
 0x40f   :  { %2050 = vpow2.f32 %v257_v10 }
 0x410   :  { %v375_v11 = vpop.xlane.xlu0 %374 }
 0x411   :  { %v379_v12 = vsub.f32 %v371_v1, %v375_v11 }
 0x413   :  { %v381_v13 = vmul.f32 1.442695, %v379_v12 }
 0x414   :  { %v378_v14 = vpop.xlane.xlu0 %377 }
 0x415   :  { %2052 = vpow2.f32 %v381_v13  ;;  %v380_v16 = vsub.f32 %v372_v3, %v378_v14 }
 0x417   :  { %v2049_v17 = vpop.eup %2048  ;;  %v383_v18 = vmul.f32 1.442695, %v380_v16 }
 0x418   :  { %v259_v19 = vsel %vm195_vm2, %v2049_v17, 0.0 }
 0x419   :  { %v2051_v20 = vpop.eup %2050  ;;  %2054 = vpow2.f32 %v383_v18  ;;  %260 = vadd.xlane.f32.xlu1 %v259_v19 }
 0x41a   :  { %v262_v21 = vsel %vm195_vm2, %v2051_v20, 0.0 }
 0x41b   :  { %263 = vadd.xlane.f32.xlu0 %v262_v21  ;;  %v2027_v21 = vld [vmem:[%s2635_s10 + $0x8] sm:$0xff]  }
 0x41f   :  { %v2053_v22 = vpop.eup %2052 }
 0x420   :  { %v385_v23 = vsel %vm195_vm2, %v2053_v22, 0.0 }
 0x421   :  { %386 = vadd.xlane.f32.xlu1 %v385_v23 }
 0x423   :  { %v2055_v24 = vpop.eup %2054 }
 0x424   :  { %v388_v25 = vsel %vm195_vm2, %v2055_v24, 0.0 }
 0x425   :  { %389 = vadd.xlane.f32.xlu0 %v388_v25 }
 0x432   :  { %270 = vrot.lane.b32.xlu1 %v2299_v41, %s2143_s1 }
 0x43b   :  { %396 = vrot.lane.b32.xlu0 %v2299_v41, %s2144_s24 }
 0x4a6   :  { %v261_v26 = vpop.xlane.xlu1 %260 }
 0x4a7   :  { %2056 = vrcp.f32 %v261_v26 }
 0x4a8   :  { %v264_v27 = vpop.xlane.xlu0 %263 }
 0x4a9   :  { %2058 = vrcp.f32 %v264_v27 }
 0x4ae   :  { %v387_v28 = vpop.xlane.xlu1 %386 }
 0x4af   :  { %2060 = vrcp.f32 %v387_v28 }
 0x4b1   :  { %v2057_v29 = vpop.eup %2056 }
 0x4b2   :  { %v271_v30 = vpop.permute.xlu1 %270  ;;  %v390_v33 = vpop.xlane.xlu0 %389  ;;  %v267_v35 = vmul.f32 %v2057_v29, %v2049_v17  ;;  %v1747_v29 = vld [vmem:[%s2633_s8] ss:$0 sm:$0xff] }
 0x4b3   :  { %v2059_v34 = vpop.eup %2058  ;;  %2062 = vrcp.f32 %v390_v33  ;;  %1886 = vmatpush3.bf16.msra.mxu0 %v271_v30 }
 0x4b4   :  { %v268_v36 = vmul.f32 %v2059_v34, %v2051_v20  ;;  %1897 = vmatprep.subr.bf16.mxu0 %v2138_v15 }
 0x4b6   :  { %v397_v37 = vpop.permute.xlu0 %396  ;;  %v269_v38 = vpack.c.bf16 %v268_v36, %v267_v35  ;;  %v1748_v36 = vld [vmem:[%s2634_s9] ss:$0 sm:$0xff] }
 0x4b8   :  { %1888 = vmatmul.mubr.msk.bf16.vlgmr.msra.gmra.mrb[4].mxu0 %vm195_vm2, %v269_v38 }
 0x4b9   :  { %1898 = vmatpush3.bf16.msra.mxu0 %v397_v37  ;;  %1899 = vmatprep.mubr.msk.bf16.mxu0 %vm2139_vm1, %v2138_v15  ;;  %v2061_v39 = vpop.eup %2060 }
 0x4ba   :  { %1909 = vmatprep.subr.bf16.mxu0 %v2138_v15  ;;  %v393_v41 = vmul.f32 %v2061_v39, %v2053_v22 }
 0x4bd   :  { %v2063_v40 = vpop.eup %2062 }
 0x4be   :  { %v394_v42 = vmul.f32 %v2063_v40, %v2055_v24 }
 0x4c0   :  { %v395_v43 = vpack.c.bf16 %v394_v42, %v393_v41  ;;  %v2028_v41 = vld [vmem:[%s2637_s12] sm:$0xff]   ;;  %v2029_v42 = vld [vmem:[%s2637_s12 + $0x8] sm:$0xff]  }
 0x4c2   :  { %1900 = vmatmul.mubr.msk.bf16.vlgmr.msra.gmra.mrb[8].mxu0 %vm195_vm2, %v395_v43  ;;  %v2030_v43 = vld [vmem:[%s2637_s12 + $0x10] sm:$0xff]  }
 0x4c3   :  { %1911 = vmatprep.mubr.msk.bf16.mxu0 %vm2139_vm1, %v2138_v15  ;;  %1910 = vmatpush3.bf16.msra.mxu0 %v2024_v44  ;;  %v2031_v44 = vld [vmem:[%s2637_s12 + $0x18] sm:$0xff]  }
 0x4c4   :  { %1923 = vmatprep.subr.bf16.mxu0 %v2138_v15 }
 0x58b   :  { %v310_v46 = vpop.f32.mrb[4].mxu0 }
 0x58c   :  { %v1889_v47 = vpop.f32.mrb[5].mxu0 }
 0x58d   :  { %v313_v49 = vpop.f32.mrb[6].mxu0 }
 0x58e   :  { %v317_v50 = vpack.c.bf16 %v313_v49, %v310_v46  ;;  %v1890_v51 = vpop.f32.mrb[7].mxu0 }
 0x590   :  { %1912 = vmatmul.mubr.msk.bf16.vlgmr.msra.gmra.mrb[12].mxu0 %vm195_vm2, %v317_v50 }
 0x591   :  { %1931 = vmatprep.mubr.msk.bf16.mxu0 %vm2139_vm1, %v2138_v15  ;;  %1924 = vmatpush3.bf16.msra.mxu0 %v2028_v41 }
 0x592   :  { %1925 = vmatprep.subr.bf16.mxu0 %v2138_v15 }
 0x595   :  { %v436_v53 = vpop.f32.mrb[8].mxu0  ;;  %1926 = vmatpush3.bf16.msra.mxu0 %v2029_v42 }
 0x596   :  { %v1901_v54 = vpop.f32.mrb[9].mxu0  ;;  %1927 = vmatprep.subr.bf16.mxu0 %v2138_v15 }
 0x597   :  { %v439_v55 = vpop.f32.mrb[10].mxu0 }
 0x598   :  { %v443_v56 = vpack.c.bf16 %v439_v55, %v436_v53  ;;  %v1902_v57 = vpop.f32.mrb[11].mxu0 }
 0x599   :  { %1928 = vmatpush3.bf16.msra.mxu0 %v2030_v43 }
 0x59a   :  { %1906 = vmatmul.mubr.msk.bf16.vlgmr.msra.gmra.mrb[8].mxu1 %vm195_vm2, %v443_v56  ;;  %1929 = vmatprep.subr.bf16.mxu0 %v2138_v15 }
 0x59b   :  { %1919 = vmatprep.mubr.msk.bf16.mxu1 %vm2139_vm1, %v2138_v15 }
 0x59d   :  { %1930 = vmatpush3.bf16.msra.mxu0 %v2031_v44 }
 0x59e   :  { %1949 = vmatprep.subr.bf16.mxu0 %v2138_v15 }
 0x663   :  { %v537_v58 = vpop.f32.mrb[12].mxu0 }
 0x664   :  { %v1913_v59 = vpop.f32.mrb[13].mxu0 }
 0x665   :  { %v540_v60 = vpop.f32.mrb[14].mxu0 }
 0x666   :  { %v1914_v61 = vpop.f32.mrb[15].mxu0 }
 0x66d   :  { %v487_v62 = vpop.f32.mrb[8].mxu1 }
 0x66e   :  { %v538_v0 = vadd.f32 %v537_v58, %v487_v62  ;;  %v1907_v1 = vpop.f32.mrb[9].mxu1 }
 0x66f   :  { %v490_v2 = vpop.f32.mrb[10].mxu1 }
 0x670   :  { %v551_v3 = vadd.f32 %v1746_v63, %v538_v0  ;;  %v541_v4 = vadd.f32 %v540_v60, %v490_v2  ;;  %v1908_v5 = vpop.f32.mrb[11].mxu1 }
 0x672   :  { %v552_v6 = vadd.f32 %v1746_v63, %v541_v4  ;;  %v553_v7 = vadd.f32 %v551_v3, %v2287_v31 }
 0x674   :  { %v557_v8 = vsel %vm73_vm0, %v553_v7, 0.0  ;;  %v554_v9 = vadd.f32 %v552_v6, %v2289_v32  ;;  %v2026_v32 = vld [vmem:[%s2635_s10] sm:$0xff]  }
 0x675   :  { %558 = vadd.xlane.f32.xlu1 %v557_v8  ;;  %1916 = vmatpush3.bf16.msra.mxu1 %v2026_v32 }
 0x676   :  { %v560_v10 = vsel %vm73_vm0, %v554_v9, 0.0  ;;  %1917 = vmatprep.subr.bf16.mxu1 %v2138_v15 }
 0x677   :  { %561 = vadd.xlane.f32.xlu0 %v560_v10 }
 0x679   :  { %1918 = vmatpush3.bf16.msra.mxu1 %v2027_v21 }
 0x67a   :  { %1935 = vmatprep.subr.bf16.mxu1 %v2138_v15 }
 0x702   :  { %v559_v11 = vpop.xlane.xlu1 %558 }
 0x703   :  { %v563_v12 = vmul.f32 0.03125, %v559_v11 }
 0x704   :  { %v562_v13 = vpop.xlane.xlu0 %561 }
 0x705   :  { %v565_v14 = vsub.f32 %v553_v7, %v563_v12  ;;  %v564_v16 = vmul.f32 0.03125, %v562_v13 }
 0x707   :  { %v566_v17 = vsub.f32 %v554_v9, %v564_v16  ;;  %v567_v18 = vmul.f32 %v565_v14, %v565_v14  ;;  %v1753_v9 = vld [vmem:[%s2638_s13] ss:$0 sm:$0xff] }
 0x709   :  { %v569_v19 = vsel %vm73_vm0, %v567_v18, 0.0  ;;  %v568_v20 = vmul.f32 %v566_v17, %v566_v17 }
 0x70a   :  { %570 = vadd.xlane.f32.xlu1 %v569_v19 }
 0x70b   :  { %v572_v31 = vsel %vm73_vm0, %v568_v20, 0.0 }
 0x70c   :  { %573 = vadd.xlane.f32.xlu0 %v572_v31 }
 0x797   :  { %v571_v22 = vpop.xlane.xlu1 %570 }
 0x798   :  { %v575_v23 = vmul.f32 0.03125, %v571_v22 }
 0x799   :  { %v574_v24 = vpop.xlane.xlu0 %573 }
 0x79a   :  { %v577_v25 = vadd.f32 1e-12, %v575_v23  ;;  %v576_v26 = vmul.f32 0.03125, %v574_v24 }
 0x79c   :  { %2064 = vrsqrt.f32 %v577_v25  ;;  %v578_v27 = vadd.f32 1e-12, %v576_v26 }
 0x79e   :  { %2066 = vrsqrt.f32 %v578_v27 }
 0x7a6   :  { %v2065_v28 = vpop.eup %2064 }
 0x7a7   :  { %v581_v30 = vmul.f32 %v2065_v28, %v565_v14 }
 0x7a8   :  { %v2067_v33 = vpop.eup %2066 }
 0x7a9   :  { %v589_v34 = vmul.f32 %v1747_v29, %v581_v30  ;;  %v582_v35 = vmul.f32 %v2067_v33, %v566_v17  ;;  %v2033_v30 = vld [vmem:[%s2658_s0 + $0x18] sm:$0xff]  }
 0x7ab   :  { %v590_v37 = vmul.f32 %v1747_v29, %v582_v35  ;;  %v597_v38 = vadd.f32 %v1748_v36, %v589_v34  ;;  %v2032_v29 = vld [vmem:[%s2658_s0 + $0x10] sm:$0xff]  }
 0x7ad   :  { %v598_v39 = vadd.f32 %v1748_v36, %v590_v37 }
 0x7af   :  { %v603_v40 = vpack.c.bf16 %v598_v39, %v597_v38 }
 0x7b1   :  { %1920 = vmatmul.mubr.msk.bf16.vlgmr.msra.gmra.mrb[12].mxu1 %vm73_vm0, %v603_v40  ;;  %v1759_v40 = vld [vmem:[%s2639_s14] ss:$0 sm:$0xff] }
 0x7b2   :  { %1939 = vmatprep.mubr.msk.bf16.mxu1 %vm2139_vm1, %v2138_v15  ;;  %1936 = vmatpush3.bf16.msra.mxu1 %v2032_v29 }
 0x7b3   :  { %1937 = vmatprep.subr.bf16.mxu1 %v2138_v15 }
 0x7b6   :  { %1938 = vmatpush3.bf16.msra.mxu1 %v2033_v30 }
 0x7b7   :  { %1943 = vmatprep.subr.bf16.mxu1 %v2138_v15 }
 0x884   :  { %v660_v46 = vpop.f32.mrb[12].mxu1 }
 0x885   :  { %v661_v47 = vadd.f32 %v1749_v45, %v660_v46  ;;  %v1921_v49 = vpop.f32.mrb[13].mxu1 }
 0x886   :  { %v663_v50 = vpop.f32.mrb[14].mxu1 }
 0x887   :  { %v669_v51 = vmul.f32 0.044715, %v661_v47  ;;  %v664_v53 = vadd.f32 %v1749_v45, %v663_v50  ;;  %v1922_v54 = vpop.f32.mrb[15].mxu1  ;;  %v667_v3 = vmul.f32 0.5, %v661_v47  ;;  %v1760_v45 = vld [vmem:[%s2640_s15] ss:$0 sm:$0xff] }
 0x889   :  { %v671_v55 = vmul.f32 %v669_v51, %v661_v47  ;;  %v670_v56 = vmul.f32 0.044715, %v664_v53  ;;  %v668_v4 = vmul.f32 0.5, %v664_v53  ;;  %v1766_v51 = vld [vmem:[%s2661_s27 + $0x1] ss:$0 sm:$0xff]  ;;  %s1720_s27 = sshll.u32 %s2146_s26, 4  ;;  %s1721_s27 = int_to_ptr.vmem [resolvable:$true] %s1720_s27 }
 0x88a   :  { %p2119_p1 = scmp.lt.s32.totalorder %s1721_s27, %s1721_s27 }
 0x88b   :  { %v673_v57 = vmul.f32 %v671_v55, %v661_v47  ;;  %v672_v58 = vmul.f32 %v670_v56, %v664_v53 }
 0x88d   :  { %v675_v59 = vadd.f32 %v673_v57, %v661_v47  ;;  %v674_v60 = vmul.f32 %v672_v58, %v664_v53 }
 0x88f   :  { %v677_v61 = vmul.f32 0.7978846, %v675_v59  ;;  %v676_v62 = vadd.f32 %v674_v60, %v664_v53 }
 0x891   :  { %2068 = vtanh.f32 %v677_v61  ;;  %v678_v63 = vmul.f32 0.7978846, %v676_v62 }
 0x893   :  { %2070 = vtanh.f32 %v678_v63 }
 0x89b   :  { %v2069_v0 = vpop.eup %2068 }
 0x89c   :  { %v681_v1 = vadd.f32 1.0, %v2069_v0 }
 0x89d   :  { %v2071_v2 = vpop.eup %2070 }
 0x89e   :  { %v682_v5 = vadd.f32 1.0, %v2071_v2  ;;  %v683_v6 = vmul.f32 %v681_v1, %v667_v3 }
 0x8a0   :  { %v684_v7 = vmul.f32 %v682_v5, %v668_v4 }
 0x8a2   :  { %v693_v8 = vpack.c.bf16 %v684_v7, %v683_v6 }
 0x8a4   :  { %1932 = vmatmul.mubr.msk.bf16.vlgmr.msra.gmra.mrb[16].mxu0 %vm725_vm3, %v693_v8 }
 0x8a5   :  { %1951 = vmatprep.mubr.msk.bf16.mxu0 %vm2139_vm1, %v2138_v15 }
 0x977   :  { %v763_v10 = vpop.f32.mrb[16].mxu0 }
 0x978   :  { %v764_v11 = vadd.f32 %v1753_v9, %v763_v10  ;;  %v1933_v12 = vpop.f32.mrb[17].mxu0 }
 0x979   :  { %v766_v13 = vpop.f32.mrb[18].mxu0 }
 0x97a   :  { %v767_v14 = vadd.f32 %v1753_v9, %v766_v13  ;;  %v1934_v16 = vpop.f32.mrb[19].mxu0  ;;  %v770_v17 = vadd.f32 %v764_v11, %v597_v38 }
 0x97c   :  { %v774_v18 = vsel %vm73_vm0, %v770_v17, 0.0  ;;  %v771_v19 = vadd.f32 %v767_v14, %v598_v39 }
 0x97d   :  { %775 = vadd.xlane.f32.xlu1 %v774_v18 }
 0x97e   :  { %v777_v20 = vsel %vm73_vm0, %v771_v19, 0.0 }
 0x97f   :  { %778 = vadd.xlane.f32.xlu0 %v777_v20 }
 0xa0a   :  { %v776_v31 = vpop.xlane.xlu1 %775 }
 0xa0b   :  { %v780_v32 = vmul.f32 0.03125, %v776_v31 }
 0xa0c   :  { %v779_v21 = vpop.xlane.xlu0 %778 }
 0xa0d   :  { %v782_v22 = vsub.f32 %v770_v17, %v780_v32  ;;  %v781_v23 = vmul.f32 0.03125, %v779_v21 }
 0xa0f   :  { %v783_v24 = vsub.f32 %v771_v19, %v781_v23  ;;  %v784_v25 = vmul.f32 %v782_v22, %v782_v22 }
 0xa11   :  { %v786_v26 = vsel %vm73_vm0, %v784_v25, 0.0  ;;  %v785_v27 = vmul.f32 %v783_v24, %v783_v24 }
 0xa12   :  { %787 = vadd.xlane.f32.xlu1 %v786_v26 }
 0xa13   :  { %v789_v28 = vsel %vm73_vm0, %v785_v27, 0.0 }
 0xa14   :  { %790 = vadd.xlane.f32.xlu0 %v789_v28 }
 0xa9f   :  { %v788_v33 = vpop.xlane.xlu1 %787 }
 0xaa0   :  { %v792_v34 = vmul.f32 0.03125, %v788_v33 }
 0xaa1   :  { %v791_v35 = vpop.xlane.xlu0 %790 }
 0xaa2   :  { %v794_v36 = vadd.f32 1e-12, %v792_v34  ;;  %v793_v37 = vmul.f32 0.03125, %v791_v35 }
 0xaa4   :  { %2072 = vrsqrt.f32 %v794_v36  ;;  %v795_v38 = vadd.f32 1e-12, %v793_v37 }
 0xaa6   :  { %2074 = vrsqrt.f32 %v795_v38 }
 0xaae   :  { %v2073_v39 = vpop.eup %2072 }
 0xaaf   :  { %v798_v41 = vmul.f32 %v2073_v39, %v782_v22 }
 0xab0   :  { %v2075_v42 = vpop.eup %2074 }
 0xab1   :  { %v806_v43 = vmul.f32 %v1759_v40, %v798_v41  ;;  %v799_v44 = vmul.f32 %v2075_v42, %v783_v24 }
 0xab3   :  { %v807_v46 = vmul.f32 %v1759_v40, %v799_v44  ;;  %v2435_v47 = vadd.f32 %v1760_v45, %v806_v43 }
 0xab5   :  { %v2437_v49 = vadd.f32 %v1760_v45, %v807_v46 }
 0xab7   :  { %v821_v50 = vpack.c.bf16 %v2437_v49, %v2435_v47 }
 0xab9   :  { %1940 = vmatmul.mubr.msk.bf16.vlgmr.msra.gmra.mrb[16].mxu1 %vm73_vm0, %v821_v50 }
 0xaba   :  { %1945 = vmatprep.mubr.msk.bf16.mxu1 %vm2139_vm1, %v2138_v15 }
 0xb8c   :  { %v879_v53 = vpop.f32.mrb[16].mxu1 }
 0xb8d   :  { %v1941_v54 = vpop.f32.mrb[17].mxu1  ;;  %v880_v56 = vadd.f32 %v1766_v51, %v879_v53 }
 0xb8e   :  { %v882_v55 = vpop.f32.mrb[18].mxu1 }
 0xb8f   :  { %v883_v57 = vadd.f32 %v1766_v51, %v882_v55  ;;  %v1942_v58 = vpop.f32.mrb[19].mxu1 }
 0xb91   :  { %v2447_v59 = vpack.c.bf16 %v883_v57, %v880_v56 }
 0xb93   :  { %1019 = vrot.lane.b32.xlu0 %v2447_v59, %s2140_s3  ;;  %893 = vrot.lane.b32.xlu1 %v2447_v59, %s2141_s28  ;;  %s2114_s3 = scalar_lea.vmem %s1721_s27, 16  ;;  %s2118_s28 = scalar_lea.vmem %s1721_s27, 32 }
 0xb94   :  { %p2115_p0 = scmp.ne.s32.totalorder %s1721_s27, %s2114_s3  ;;  %p2120_p2 = scmp.lt.s32.totalorder %s2118_s28, %s2114_s3 }
 0xb96   :  { %p2121_p3 = por %p2120_p2, %p2119_p1 }
 0xb97   :  { %1017 = vrot.lane.b32.xlu1 %v2447_v59, %s2142_s29 }
 0xb98   :  { %p2122_p4 = pnand %p2121_p3, %p2115_p0 }
 0xc05   :  { %v894_v60 = vpop.permute.xlu1 %893  ;;  %v1020_v62 = vpop.permute.xlu0 %1019 }
 0xc06   :  { %v899_v61 = vsel %vm195_vm2, %v894_v60, 0  ;;  %v1025_v63 = vsel %vm195_vm2, %v1020_v62, 0  ;;  %v2034_v60 = vld [vmem:[%s2631_s6 + $0x10] sm:$0xff]  }
 0xc07   :  { %1944 = vmatpush3.bf16.xpose.msra.mxu1 %v899_v61  ;;  %v2035_v61 = vld [vmem:[%s2631_s6 + $0x18] sm:$0xff]  }
 0xc08   :  { %1955 = vmatprep.subr.bf16.mxu1 %v2138_v15 }
 0xc09   :  { %v1018_v0 = vpop.permute.xlu1 %1017 }
 0xc0e   :  { %1946 = vmatmul.mubr.msk.bf16.vlgmr.msra.gmra.mrb[20].mxu1 %vm195_vm2, %v2447_v59 }
 0xc0f   :  { %1956 = vmatpush3.bf16.xpose.msra.mxu1 %v1025_v63  ;;  %1957 = vmatprep.mubr.msk.bf16.mxu1 %vm2139_vm1, %v2138_v15 }
 0xc10   :  { %1967 = vmatprep.subr.bf16.mxu1 %v2138_v15 }
 0xc16   :  { %1958 = vmatmul.mubr.msk.bf16.vlgmr.msra.gmra.mrb[24].mxu1 %vm195_vm2, %v1018_v0 }
 0xc17   :  { %1969 = vmatprep.mubr.msk.bf16.mxu1 %vm2139_vm1, %v2138_v15  ;;  %1968 = vmatpush3.bf16.msra.mxu1 %v2035_v61 }
 0xc18   :  { %1979 = vmatprep.subr.bf16.mxu1 %v2138_v15 }
 0xce1   :  { %v935_v1 = vpop.f32.mrb[20].mxu1 }
 0xce2   :  { %v942_v2 = vmul.f32 0.25, %v935_v1  ;;  %v1947_v3 = vpop.f32.mrb[21].mxu1 }
 0xce3   :  { %v938_v4 = vpop.f32.mrb[22].mxu1 }
 0xce4   :  { %v943_v5 = vmul.f32 0.25, %v938_v4  ;;  %v1948_v6 = vpop.f32.mrb[23].mxu1  ;;  %v944_v7 = vadd.f32 %v942_v2, %v2321_v48 }
 0xce6   :  { %v946_v8 = vsel %vm195_vm2, %v944_v7, -inf  ;;  %v945_v9 = vadd.f32 %v943_v5, %v2326_v52 }
 0xce7   :  { %947 = vmax.xlane.f32.xlu1 %v946_v8 }
 0xce8   :  { %v949_v10 = vsel %vm195_vm2, %v945_v9, -inf }
 0xce9   :  { %950 = vmax.xlane.f32.xlu0 %v949_v10  ;;  %v1061_v11 = vpop.f32.mrb[24].mxu1 }
 0xcea   :  { %v1068_v12 = vmul.f32 0.25, %v1061_v11  ;;  %v1959_v13 = vpop.f32.mrb[25].mxu1 }
 0xceb   :  { %v1064_v14 = vpop.f32.mrb[26].mxu1  ;;  %v1783_v13 = vld [vmem:[%s2632_s7 + $0x1] ss:$0 sm:$0xff] }
 0xcec   :  { %v1069_v16 = vmul.f32 0.25, %v1064_v14  ;;  %v1960_v17 = vpop.f32.mrb[27].mxu1  ;;  %v1070_v18 = vadd.f32 %v1068_v12, %v2321_v48 }
 0xcee   :  { %v1072_v19 = vsel %vm195_vm2, %v1070_v18, -inf  ;;  %v1071_v20 = vadd.f32 %v1069_v16, %v2326_v52 }
 0xcef   :  { %1073 = vmax.xlane.f32.xlu0 %v1072_v19 }
 0xcf0   :  { %v1075_v31 = vsel %vm195_vm2, %v1071_v20, -inf }
 0xcf1   :  { %1076 = vmax.xlane.f32.xlu1 %v1075_v31 }
 0xd74   :  { %v948_v32 = vpop.xlane.xlu1 %947 }
 0xd75   :  { %v952_v21 = vsub.f32 %v944_v7, %v948_v32 }
 0xd76   :  { %v951_v22 = vpop.xlane.xlu0 %950 }
 0xd77   :  { %v954_v23 = vmul.f32 1.442695, %v952_v21  ;;  %v953_v24 = vsub.f32 %v945_v9, %v951_v22 }
 0xd79   :  { %2076 = vpow2.f32 %v954_v23  ;;  %v956_v25 = vmul.f32 1.442695, %v953_v24 }
 0xd7b   :  { %2078 = vpow2.f32 %v956_v25 }
 0xd7c   :  { %v1074_v26 = vpop.xlane.xlu0 %1073 }
 0xd7d   :  { %v1078_v27 = vsub.f32 %v1070_v18, %v1074_v26 }
 0xd7e   :  { %v1077_v28 = vpop.xlane.xlu1 %1076 }
 0xd7f   :  { %v1080_v48 = vmul.f32 1.442695, %v1078_v27  ;;  %v1079_v29 = vsub.f32 %v1071_v20, %v1077_v28 }
 0xd81   :  { %2080 = vpow2.f32 %v1080_v48  ;;  %v1082_v30 = vmul.f32 1.442695, %v1079_v29 }
 0xd83   :  { %v2077_v52 = vpop.eup %2076  ;;  %2082 = vpow2.f32 %v1082_v30 }
 0xd84   :  { %v958_v33 = vsel %vm195_vm2, %v2077_v52, 0.0 }
 0xd85   :  { %v2079_v34 = vpop.eup %2078  ;;  %959 = vadd.xlane.f32.xlu0 %v958_v33  ;;  %v2037_v33 = vld [vmem:[%s2635_s10 + $0x18] sm:$0xff]  }
 0xd86   :  { %v961_v35 = vsel %vm195_vm2, %v2079_v34, 0.0 }
 0xd87   :  { %962 = vadd.xlane.f32.xlu1 %v961_v35 }
 0xd8b   :  { %v2081_v36 = vpop.eup %2080 }
 0xd8c   :  { %v1084_v37 = vsel %vm195_vm2, %v2081_v36, 0.0 }
 0xd8d   :  { %v2083_v38 = vpop.eup %2082  ;;  %1085 = vadd.xlane.f32.xlu0 %v1084_v37 }
 0xd8e   :  { %v1087_v39 = vsel %vm195_vm2, %v2083_v38, 0.0 }
 0xd8f   :  { %1088 = vadd.xlane.f32.xlu1 %v1087_v39 }
 0xda0   :  { %1095 = vrot.lane.b32.xlu1 %v2447_v59, %s2144_s24 }
 0xda3   :  { %969 = vrot.lane.b32.xlu0 %v2447_v59, %s2143_s1 }
 0xe12   :  { %v960_v40 = vpop.xlane.xlu0 %959 }
 0xe13   :  { %2084 = vrcp.f32 %v960_v40 }
 0xe14   :  { %v963_v41 = vpop.xlane.xlu1 %962 }
 0xe15   :  { %2086 = vrcp.f32 %v963_v41  ;;  %v1786_v41 = vld [vmem:[%s2633_s8 + $0x1] ss:$0 sm:$0xff] }
 0xe1a   :  { %v1086_v42 = vpop.xlane.xlu0 %1085 }
 0xe1b   :  { %2088 = vrcp.f32 %v1086_v42 }
 0xe1c   :  { %v1089_v43 = vpop.xlane.xlu1 %1088 }
 0xe1d   :  { %v2085_v44 = vpop.eup %2084  ;;  %2090 = vrcp.f32 %v1089_v43 }
 0xe1e   :  { %v970_v45 = vpop.permute.xlu0 %969  ;;  %v966_v50 = vmul.f32 %v2085_v44, %v2077_v52 }
 0xe1f   :  { %v2087_v46 = vpop.eup %2086  ;;  %1950 = vmatpush3.bf16.msra.mxu0 %v970_v45 }
 0xe20   :  { %v967_v51 = vmul.f32 %v2087_v46, %v2079_v34  ;;  %1961 = vmatprep.subr.bf16.mxu0 %v2138_v15  ;;  %v1096_v54 = vpop.permute.xlu1 %1095  ;;  %v1787_v46 = vld [vmem:[%s2634_s9 + $0x1] ss:$0 sm:$0xff] }
 0xe22   :  { %v968_v53 = vpack.c.bf16 %v967_v51, %v966_v50 }
 0xe24   :  { %1952 = vmatmul.mubr.msk.bf16.vlgmr.msra.gmra.mrb[20].mxu0 %vm195_vm2, %v968_v53 }
 0xe25   :  { %v2089_v55 = vpop.eup %2088  ;;  %1962 = vmatpush3.bf16.msra.mxu0 %v1096_v54  ;;  %1963 = vmatprep.mubr.msk.bf16.mxu0 %vm2139_vm1, %v2138_v15 }
 0xe26   :  { %1973 = vmatprep.subr.bf16.mxu0 %v2138_v15  ;;  %v1092_v57 = vmul.f32 %v2089_v55, %v2081_v36  ;;  %v2038_v55 = vld [vmem:[%s2637_s12 + $0x20] sm:$0xff]  }
 0xe27   :  { %v2091_v56 = vpop.eup %2090 }
 0xe28   :  { %v1093_v58 = vmul.f32 %v2091_v56, %v2083_v38  ;;  %v2039_v56 = vld [vmem:[%s2637_s12 + $0x28] sm:$0xff]  }
 0xe2a   :  { %v1094_v59 = vpack.c.bf16 %v1093_v58, %v1092_v57  ;;  %v2040_v57 = vld [vmem:[%s2637_s12 + $0x30] sm:$0xff]   ;;  %v2041_v58 = vld [vmem:[%s2637_s12 + $0x38] sm:$0xff]  }
 0xe2c   :  { %1964 = vmatmul.mubr.msk.bf16.vlgmr.msra.gmra.mrb[24].mxu0 %vm195_vm2, %v1094_v59  ;;  %v1793_v59 = vld [vmem:[%s2636_s11 + $0x1] ss:$0 sm:$0xff] }
 0xe2d   :  { %1975 = vmatprep.mubr.msk.bf16.mxu0 %vm2139_vm1, %v2138_v15  ;;  %1974 = vmatpush3.bf16.msra.mxu0 %v2034_v60 }
 0xe2e   :  { %1987 = vmatprep.subr.bf16.mxu0 %v2138_v15 }
 0xef7   :  { %v1009_v62 = vpop.f32.mrb[20].mxu0 }
 0xef8   :  { %v1953_v63 = vpop.f32.mrb[21].mxu0 }
 0xef9   :  { %v1012_v0 = vpop.f32.mrb[22].mxu0 }
 0xefa   :  { %v1016_v1 = vpack.c.bf16 %v1012_v0, %v1009_v62  ;;  %v1954_v2 = vpop.f32.mrb[23].mxu0 }
 0xefc   :  { %1976 = vmatmul.mubr.msk.bf16.vlgmr.msra.gmra.mrb[28].mxu0 %vm195_vm2, %v1016_v1 }
 0xefd   :  { %1995 = vmatprep.mubr.msk.bf16.mxu0 %vm2139_vm1, %v2138_v15  ;;  %1988 = vmatpush3.bf16.msra.mxu0 %v2038_v55 }
 0xefe   :  { %1989 = vmatprep.subr.bf16.mxu0 %v2138_v15 }
 0xeff   :  { %v1135_v3 = vpop.f32.mrb[24].mxu0 }
 0xf00   :  { %v1965_v4 = vpop.f32.mrb[25].mxu0 }
 0xf01   :  { %v1138_v5 = vpop.f32.mrb[26].mxu0  ;;  %1990 = vmatpush3.bf16.msra.mxu0 %v2039_v56 }
 0xf02   :  { %v1142_v6 = vpack.c.bf16 %v1138_v5, %v1135_v3  ;;  %v1966_v7 = vpop.f32.mrb[27].mxu0  ;;  %1991 = vmatprep.subr.bf16.mxu0 %v2138_v15 }
 0xf04   :  { %1970 = vmatmul.mubr.msk.bf16.vlgmr.msra.gmra.mrb[28].mxu1 %vm195_vm2, %v1142_v6 }
 0xf05   :  { %1983 = vmatprep.mubr.msk.bf16.mxu1 %vm2139_vm1, %v2138_v15  ;;  %1992 = vmatpush3.bf16.msra.mxu0 %v2040_v57  ;;  %v1815_v57 = vld [vmem:[%s2640_s15 + $0x1] ss:$0 sm:$0xff] }
 0xf06   :  { %1993 = vmatprep.subr.bf16.mxu0 %v2138_v15 }
 0xf09   :  { %1994 = vmatpush3.bf16.msra.mxu0 %v2041_v58 }
 0xfcf   :  { %v1236_v8 = vpop.f32.mrb[28].mxu0 }
 0xfd0   :  { %v1977_v9 = vpop.f32.mrb[29].mxu0 }
 0xfd1   :  { %v1239_v10 = vpop.f32.mrb[30].mxu0 }
 0xfd2   :  { %v1978_v11 = vpop.f32.mrb[31].mxu0 }
 0xfd7   :  { %v1186_v12 = vpop.f32.mrb[28].mxu1 }
 0xfd8   :  { %v1237_v14 = vadd.f32 %v1236_v8, %v1186_v12  ;;  %v1971_v16 = vpop.f32.mrb[29].mxu1 }
 0xfd9   :  { %v1189_v17 = vpop.f32.mrb[30].mxu1 }
 0xfda   :  { %v1251_v18 = vadd.f32 %v1783_v13, %v1237_v14  ;;  %v1240_v19 = vadd.f32 %v1239_v10, %v1189_v17  ;;  %v1972_v20 = vpop.f32.mrb[31].mxu1 }
 0xfdc   :  { %v1252_v31 = vadd.f32 %v1783_v13, %v1240_v19  ;;  %v1253_v32 = vadd.f32 %v1251_v18, %v2435_v47 }
 0xfde   :  { %v1259_v21 = vsel %vm73_vm0, %v1253_v32, 0.0  ;;  %v1254_v22 = vadd.f32 %v1252_v31, %v2437_v49  ;;  %v2036_v49 = vld [vmem:[%s2635_s10 + $0x10] sm:$0xff]  }
 0xfdf   :  { %1260 = vadd.xlane.f32.xlu1 %v1259_v21  ;;  %1980 = vmatpush3.bf16.msra.mxu1 %v2036_v49 }
 0xfe0   :  { %v1262_v23 = vsel %vm73_vm0, %v1254_v22, 0.0  ;;  %1981 = vmatprep.subr.bf16.mxu1 %v2138_v15 }
 0xfe1   :  { %1263 = vadd.xlane.f32.xlu0 %v1262_v23 }
 0xfe3   :  { %1982 = vmatpush3.bf16.msra.mxu1 %v2037_v33 }
 0xfe4   :  { %1999 = vmatprep.subr.bf16.mxu1 %v2138_v15 }
0x106c   :  { %v1261_v24 = vpop.xlane.xlu1 %1260 }
0x106d   :  { %v1265_v25 = vmul.f32 0.03125, %v1261_v24 }
0x106e   :  { %v1264_v26 = vpop.xlane.xlu0 %1263 }
0x106f   :  { %v1267_v27 = vsub.f32 %v1253_v32, %v1265_v25  ;;  %v1266_v28 = vmul.f32 0.03125, %v1264_v26  ;;  %v1806_v32 = vld [vmem:[%s2638_s13 + $0x1] ss:$0 sm:$0xff] }
0x1071   :  { %v1268_v48 = vsub.f32 %v1254_v22, %v1266_v28  ;;  %v1269_v29 = vmul.f32 %v1267_v27, %v1267_v27 }
0x1073   :  { %v1271_v30 = vsel %vm73_vm0, %v1269_v29, 0.0  ;;  %v1270_v52 = vmul.f32 %v1268_v48, %v1268_v48 }
0x1074   :  { %1272 = vadd.xlane.f32.xlu0 %v1271_v30 }
0x1075   :  { %v1274_v47 = vsel %vm73_vm0, %v1270_v52, 0.0 }
0x1076   :  { %1275 = vadd.xlane.f32.xlu1 %v1274_v47 }
0x1101   :  { %v1273_v34 = vpop.xlane.xlu0 %1272 }
0x1102   :  { %v1277_v35 = vmul.f32 0.03125, %v1273_v34 }
0x1103   :  { %v1276_v36 = vpop.xlane.xlu1 %1275 }
0x1104   :  { %v1279_v37 = vadd.f32 1e-12, %v1277_v35  ;;  %v1278_v38 = vmul.f32 0.03125, %v1276_v36 }
0x1106   :  { %2092 = vrsqrt.f32 %v1279_v37  ;;  %v1280_v39 = vadd.f32 1e-12, %v1278_v38 }
0x1108   :  { %2094 = vrsqrt.f32 %v1280_v39  ;;  %v2042_v39 = vld [vmem:[%s2641_s16] sm:$0xff]  }
0x1110   :  { %v2093_v40 = vpop.eup %2092 }
0x1111   :  { %v1283_v42 = vmul.f32 %v2093_v40, %v1267_v27  ;;  %v2043_v40 = vld [vmem:[%s2641_s16 + $0x8] sm:$0xff]  }
0x1112   :  { %v2095_v43 = vpop.eup %2094 }
0x1113   :  { %v1291_v44 = vmul.f32 %v1786_v41, %v1283_v42  ;;  %v1284_v45 = vmul.f32 %v2095_v43, %v1268_v48 }
0x1115   :  { %v1292_v50 = vmul.f32 %v1786_v41, %v1284_v45  ;;  %v1299_v51 = vadd.f32 %v1787_v46, %v1291_v44 }
0x1117   :  { %v1300_v53 = vadd.f32 %v1787_v46, %v1292_v50 }
0x1119   :  { %v1306_v54 = vpack.c.bf16 %v1300_v53, %v1299_v51 }
0x111b   :  { %1984 = vmatmul.mubr.msk.bf16.vlgmr.msra.gmra.mrb[32].mxu1 %vm73_vm0, %v1306_v54 }
0x111c   :  { %2003 = vmatprep.mubr.msk.bf16.mxu1 %vm2139_vm1, %v2138_v15  ;;  %2000 = vmatpush3.bf16.msra.mxu1 %v2042_v39 }
0x111d   :  { %2001 = vmatprep.subr.bf16.mxu1 %v2138_v15 }
0x1120   :  { %2002 = vmatpush3.bf16.msra.mxu1 %v2043_v40 }
0x11ee   :  { %v1364_v60 = vpop.f32.mrb[32].mxu1 }
0x11ef   :  { %v1365_v61 = vadd.f32 %v1793_v59, %v1364_v60  ;;  %v1985_v62 = vpop.f32.mrb[33].mxu1 }
0x11f0   :  { %v1367_v63 = vpop.f32.mrb[34].mxu1  ;;  %v2145_v62 = vmov 0  }
0x11f1   :  { %v1373_v0 = vmul.f32 0.044715, %v1365_v61  ;;  %v1368_v1 = vadd.f32 %v1793_v59, %v1367_v63  ;;  %v1986_v2 = vpop.f32.mrb[35].mxu1  ;;  %v1371_v16 = vmul.f32 0.5, %v1365_v61  ;;  %2021 = vset.pattern.permute.xlu1 %v2145_v62  ;;  %2020 = vset.pattern.permute.xlu0 %v2145_v62  ;;  %v1816_v63 = vld [vmem:[%s2642_s17] ss:$0 sm:$0xff] }
0x11f3   :  { %v1375_v3 = vmul.f32 %v1373_v0, %v1365_v61  ;;  %v1374_v4 = vmul.f32 0.044715, %v1368_v1  ;;  %v1372_v17 = vmul.f32 0.5, %v1368_v1 }
0x11f5   :  { %v1377_v5 = vmul.f32 %v1375_v3, %v1365_v61  ;;  %v1376_v6 = vmul.f32 %v1374_v4, %v1368_v1 }
0x11f7   :  { %v1379_v7 = vadd.f32 %v1377_v5, %v1365_v61  ;;  %v1378_v8 = vmul.f32 %v1376_v6, %v1368_v1 }
0x11f9   :  { %v1381_v9 = vmul.f32 0.7978846, %v1379_v7  ;;  %v1380_v10 = vadd.f32 %v1378_v8, %v1368_v1  ;;  %v1592_v8 = vld [vmem:[%s2643_s18 + $0x8] sm:$0xff] }
0x11fb   :  { %2096 = vtanh.f32 %v1381_v9  ;;  %v1382_v11 = vmul.f32 0.7978846, %v1380_v10  ;;  %v1591_v9 = vld [vmem:[%s2643_s18] sm:$0xff] }
0x11fd   :  { %2098 = vtanh.f32 %v1382_v11 }
0x1205   :  { %v2097_v12 = vpop.eup %2096 }
0x1206   :  { %v1385_v13 = vadd.f32 1.0, %v2097_v12 }
0x1207   :  { %v2099_v14 = vpop.eup %2098 }
0x1208   :  { %v1386_v18 = vadd.f32 1.0, %v2099_v14  ;;  %v1387_v19 = vmul.f32 %v1385_v13, %v1371_v16  ;;  %v1595_v16 = vlaneseq }
0x120a   :  { %v1388_v20 = vmul.f32 %v1386_v18, %v1372_v17  ;;  %v1596_v18 = vand.u32 127, %v1595_v16 }
0x120c   :  { %v1398_v31 = vpack.c.bf16 %v1388_v20, %v1387_v19 }
0x120e   :  { %1996 = vmatmul.mubr.msk.bf16.vlgmr.msra.gmra.mrb[32].mxu0 %vm725_vm3, %v1398_v31 }
0x12e1   :  { %v1468_v21 = vpop.f32.mrb[32].mxu0 }
0x12e2   :  { %v1469_v22 = vadd.f32 %v1806_v32, %v1468_v21  ;;  %v1997_v23 = vpop.f32.mrb[33].mxu0 }
0x12e3   :  { %v1471_v24 = vpop.f32.mrb[34].mxu0 }
0x12e4   :  { %v1472_v25 = vadd.f32 %v1806_v32, %v1471_v24  ;;  %v1998_v26 = vpop.f32.mrb[35].mxu0  ;;  %v1475_v27 = vadd.f32 %v1469_v22, %v1299_v51  ;;  %v1814_v51 = vld [vmem:[%s2639_s14 + $0x1] ss:$0 sm:$0xff] }
0x12e5   :  { %v1593_v26 = vld [vmem:[%s2644_s19] sm:$0xff] }
0x12e6   :  { %v1481_v28 = vsel %vm73_vm0, %v1475_v27, 0.0  ;;  %v1476_v48 = vadd.f32 %v1472_v25, %v1300_v53 }
0x12e7   :  { %1482 = vadd.xlane.f32.xlu0 %v1481_v28 }
0x12e8   :  { %v1484_v29 = vsel %vm73_vm0, %v1476_v48, 0.0 }
0x12e9   :  { %1485 = vadd.xlane.f32.xlu1 %v1484_v29  ;;  %v1660_v29 = vsel %vm1646_vm8, %v1593_v26, 0.0 }
0x1374   :  { %v1483_v30 = vpop.xlane.xlu0 %1482 }
0x1375   :  { %v1487_v52 = vmul.f32 0.03125, %v1483_v30 }
0x1376   :  { %v1486_v47 = vpop.xlane.xlu1 %1485 }
0x1377   :  { %v1489_v49 = vsub.f32 %v1475_v27, %v1487_v52  ;;  %v1488_v33 = vmul.f32 0.03125, %v1486_v47  ;;  %v1594_v27 = vld [vmem:[%s2644_s19 + $0x8] sm:$0xff] }
0x1378   :  { %v1661_v30 = vsel %vm1646_vm8, %v1594_v27, 0.0 }
0x1379   :  { %v1490_v34 = vsub.f32 %v1476_v48, %v1488_v33  ;;  %v1491_v35 = vmul.f32 %v1489_v49, %v1489_v49 }
0x137b   :  { %v1493_v36 = vsel %vm73_vm0, %v1491_v35, 0.0  ;;  %v1492_v37 = vmul.f32 %v1490_v34, %v1490_v34 }
0x137c   :  { %1494 = vadd.xlane.f32.xlu0 %v1493_v36 }
0x137d   :  { %v1496_v38 = vsel %vm73_vm0, %v1492_v37, 0.0 }
0x137e   :  { %1497 = vadd.xlane.f32.xlu1 %v1496_v38 }
0x1409   :  { %v1495_v41 = vpop.xlane.xlu0 %1494 }
0x140a   :  { %v1499_v42 = vmul.f32 0.03125, %v1495_v41 }
0x140b   :  { %v1498_v43 = vpop.xlane.xlu1 %1497 }
0x140c   :  { %v1501_v44 = vadd.f32 1e-12, %v1499_v42  ;;  %v1500_v45 = vmul.f32 0.03125, %v1498_v43 }
0x140e   :  { %2100 = vrsqrt.f32 %v1501_v44  ;;  %v1502_v46 = vadd.f32 1e-12, %v1500_v45 }
0x1410   :  { %2102 = vrsqrt.f32 %v1502_v46 }
0x1418   :  { %v2101_v50 = vpop.eup %2100 }
0x1419   :  { %v1505_v53 = vmul.f32 %v2101_v50, %v1489_v49  ;;  %v1662_v49 = vadd.f32 %v1661_v30, %v1660_v29 }
0x141a   :  { %v2103_v54 = vpop.eup %2102 }
0x141b   :  { %v1513_v55 = vmul.f32 %v1814_v51, %v1505_v53  ;;  %v1506_v56 = vmul.f32 %v2103_v54, %v1490_v34 }
0x141d   :  { %v1514_v58 = vmul.f32 %v1814_v51, %v1506_v56  ;;  %v1521_v59 = vadd.f32 %v1815_v57, %v1513_v55 }
0x141f   :  { %v1522_v60 = vadd.f32 %v1815_v57, %v1514_v58 }
0x1421   :  { %v1527_v61 = vpack.c.bf16 %v1522_v60, %v1521_v59 }
0x1423   :  { %2004 = vmatmul.mubr.msk.bf16.vlgmr.msra.gmra.mrb[36].mxu1 %vm73_vm0, %v1527_v61 }
0x14f6   :  { %v1584_v0 = vpop.f32.mrb[36].mxu1 }
0x14f7   :  { %v1585_v1 = vadd.f32 %v1816_v63, %v1584_v0  ;;  %v2005_v2 = vpop.f32.mrb[37].mxu1 }
0x14f8   :  { %v1587_v3 = vpop.f32.mrb[38].mxu1 }
0x14f9   :  { %v2573_v4 = vadd.f32 %v1816_v63, %v1587_v3  ;;  %v2006_v5 = vpop.f32.mrb[39].mxu1  ;;  %v1610_v6 = vsel %vm1609_vm4, %v1585_v1, -inf }
0x14fa   :  { %1611 = vmax.xlane.f32.xlu0 %v1610_v6 }
0x14fb   :  { %v1613_v7 = vsel %vm1609_vm4, %v2573_v4, -inf }
0x14fc   :  { %1614 = vmax.xlane.f32.xlu1 %v1613_v7 }
0x150d   :  { %1601 = vperm.xlu1 %2021, %v1592_v8  }
0x1510   :  { %1598 = vperm.xlu0 %2020, %v1591_v9  }
0x1587   :  { %v1612_v10 = vpop.xlane.xlu0 %1611 }
0x1588   :  { %v1616_v11 = vsub.f32 %v1585_v1, %v1612_v10  ;;  %vm1678_vm7 = vcmp.eq.f32.partialorder %v1585_v1, %v1612_v10 }
0x1589   :  { %v1615_v12 = vpop.xlane.xlu1 %1614 }
0x158a   :  { %v1618_v13 = vmul.f32 1.442695, %v1616_v11  ;;  %v1617_v14 = vsub.f32 %v2573_v4, %v1615_v12  ;;  %vm1679_vm9 = vcmp.eq.f32.partialorder %v2573_v4, %v1615_v12 }
0x158b   :  { %v1681_v54 = vsel %vm1679_vm9, %v1596_v18, 5 }
0x158c   :  { %2104 = vpow2.f32 %v1618_v13  ;;  %v1620_v17 = vmul.f32 1.442695, %v1617_v14  ;;  %v1697_v59 = vsel %vm1609_vm4, %v1681_v54, 2147483647 }
0x158d   :  { %v1602_v20 = vpop.permute.xlu1 %1601  ;;  %v1699_v63 = vshra.s32 %v1697_v59, 16 }
0x158e   :  { %2106 = vpow2.f32 %v1620_v17  ;;  %vm1604_vm6 = vcmp.eq.s32.totalorder %v1596_v18, %v1602_v20 }
0x158f   :  { %v1599_v19 = vpop.permute.xlu0 %1598  ;;  %v1821_v24 = vsel %vm1604_vm6, 1.0, %v2138_v15  ;;  %v1701_v0 = vcvt.s32.f32 %v1699_v63 }
0x1590   :  { %vm1603_vm5 = vcmp.eq.s32.totalorder %v1596_v18, %v1599_v19  ;;  %v1635_v48 = vmul.f32 %v1821_v24, %v2573_v4 }
0x1591   :  { %v1820_v31 = vsel %vm1603_vm5, 1.0, %v2138_v15  ;;  %v1680_v15 = vsel %vm1678_vm7, %v1596_v18, 5 }
0x1592   :  { %v1634_v22 = vmul.f32 %v1820_v31, %v1585_v1  ;;  %v1639_v52 = vsel %vm1609_vm4, %v1635_v48, 0.0  ;;  %v1682_v47 = vsel %vm1609_vm4, %v1680_v15, 2147483647 }
0x1593   :  { %v1684_v33 = vshra.s32 %v1682_v47, 16  ;;  %v1683_v42 = vand.u32 65535, %v1682_v47 }
0x1594   :  { %v1636_v28 = vsel %vm1609_vm4, %v1634_v22, 0.0 }
0x1595   :  { %v1686_v34 = vcvt.s32.f32 %v1684_v33  ;;  %v1685_v53 = vcvt.s32.f32 %v1683_v42 }
0x1596   :  { %v2105_v32 = vpop.eup %2104 }
0x1597   :  { %v1622_v21 = vsel %vm1609_vm4, %v2105_v32, 0.0 }
0x1598   :  { %v2107_v23 = vpop.eup %2106  ;;  %1623 = vadd.xlane.f32.xlu1 %v1622_v21 }
0x1599   :  { %v1625_v25 = vsel %vm1609_vm4, %v2107_v23, 0.0 }
0x159a   :  { %1626 = vadd.xlane.f32.xlu0 %v1625_v25 }
0x159c   :  { %1637 = vadd.xlane.f32.xlu1 %v1636_v28 }
0x15a0   :  { %1640 = vadd.xlane.f32.xlu1 %v1639_v52 }
0x15a4   :  { %1663 = vadd.xlane.f32.xlu1 %v1662_v49 }
0x15a8   :  { %1687 = vmin.xlane.f32.xlu1 %v1686_v34 }
0x1625   :  { %v1624_v35 = vpop.xlane.xlu1 %1623 }
0x1626   :  { %2108 = vlog2.f32 %v1624_v35 }
0x1627   :  { %v1627_v36 = vpop.xlane.xlu0 %1626 }
0x1628   :  { %2110 = vlog2.f32 %v1627_v36 }
0x1629   :  { %v1638_v37 = vpop.xlane.xlu1 %1637 }
0x162d   :  { %v1641_v38 = vpop.xlane.xlu1 %1640 }
0x1630   :  { %v2109_v39 = vpop.eup %2108 }
0x1631   :  { %v1629_v40 = vmul.f32 0.6931472, %v2109_v39  ;;  %v1664_v41 = vpop.xlane.xlu1 %1663 }
0x1632   :  { %v2111_v43 = vpop.eup %2110  ;;  %v1665_v2 = vrot.slane %v1664_v41, 4 }
0x1633   :  { %v1631_v44 = vmul.f32 0.6931472, %v2111_v43  ;;  %v1632_v45 = vadd.f32 %v1629_v40, %v1612_v10  ;;  %v1698_v10 = vand.u32 65535, %v1697_v59 }
0x1634   :  { %v1666_v6 = vadd.f32 %v1665_v2, %v1664_v41 }
0x1635   :  { %v1642_v46 = vsub.f32 %v1632_v45, %v1638_v37  ;;  %v1633_v50 = vadd.f32 %v1631_v44, %v1615_v12  ;;  %v1688_v51 = vpop.xlane.xlu1 %1687  ;;  %v1700_v14 = vcvt.s32.f32 %v1698_v10 }
0x1636   :  { %vm1689_vm10 = vcmp.eq.f32.partialorder %v1686_v34, %v1688_v51  ;;  %v1694_v1 = vcvt.f32.s32 %v1688_v51  ;;  %v1667_v8 = vrot.slane %v1666_v6, 2 }
0x1637   :  { %v1644_v55 = vmul.f32 %v1642_v46, %v1593_v26  ;;  %v1643_v56 = vsub.f32 %v1633_v50, %v1641_v38  ;;  %v1690_v57 = vsel %vm1689_vm10, %v1685_v53, inf }
0x1638   :  { %1691 = vmin.xlane.f32.xlu0 %v1690_v57  ;;  %v1695_v4 = vshll.u32 %v1694_v1, 16  ;;  %v1668_v16 = vadd.f32 %v1667_v8, %v1666_v6 }
0x1639   :  { %v1645_v58 = vmul.f32 %v1643_v56, %v1594_v27  ;;  %v1647_v60 = vsel %vm1646_vm8, %v1644_v55, 0.0 }
0x163a   :  { %v1669_v20 = vrot.slane %v1668_v16, 1 }
0x163b   :  { %v1648_v61 = vsel %vm1646_vm8, %v1645_v58, 0.0 }
0x163c   :  { %v1649_v62 = vadd.f32 %v1648_v61, %v1647_v60  ;;  %v1670_v21 = vadd.f32 %v1669_v20, %v1668_v16 }
0x163e   :  { %1650 = vadd.xlane.f32.xlu1 %v1649_v62 }
0x1642   :  { %1702 = vmin.xlane.f32.xlu1 %v1701_v0 }
0x16c5   :  { %v1692_v3 = vpop.xlane.xlu0 %1691 }
0x16c6   :  { %v1693_v5 = vcvt.f32.s32 %v1692_v3 }
0x16c8   :  { %v1696_v7 = vadd.s32 %v1695_v4, %v1693_v5 }
0x16ca   :  { %1712 = vst.msk [vmem:[%s2646_s21] sm:$0xff] %vm1646_vm8, %v1696_v7 }
0x16cb   :  { %v1651_v9 = vpop.xlane.xlu1 %1650 }
0x16cc   :  { %v1652_v11 = vrot.slane %v1651_v9, 4 }
0x16ce   :  { %v1653_v12 = vadd.f32 %v1652_v11, %v1651_v9 }
0x16cf   :  { %v1703_v13 = vpop.xlane.xlu1 %1702 }
0x16d0   :  { %v1654_v17 = vrot.slane %v1653_v12, 2  ;;  %vm1704_vm11 = vcmp.eq.f32.partialorder %v1701_v0, %v1703_v13 }
0x16d1   :  { %v1705_v18 = vsel %vm1704_vm11, %v1700_v14, inf }
0x16d2   :  { %1706 = vmin.xlane.f32.xlu1 %v1705_v18  ;;  %v1655_v19 = vadd.f32 %v1654_v17, %v1653_v12 }
0x16d4   :  { %v1656_v31 = vrot.slane %v1655_v19, 1 }
0x16d6   :  { %v1657_v32 = vadd.f32 %v1656_v31, %v1655_v19 }
0x16d8   :  { %2007 = vpush %v1657_v32 }
0x16d9   :  { %2009 = vpush %v1670_v21 }
0x1709   :  { %s2008_s25 = spop %2007 }
0x170a   :  { %s2010_s9 = spop %2009  ;;  %v1659_v25 = vstv %s2008_s25 }
0x170b   :  { %v1672_v22 = vstv %s2010_s9 }
0x170c   :  { %v1673_v23 = vmax.f32 %v1672_v22, 1.0 }
0x170e   :  { %2112 = vrcp.f32 %v1673_v23 }
0x1718   :  { %v2113_v24 = vpop.eup %2112 }
0x1719   :  { %v1675_v26 = vmul.f32 %v2113_v24, %v1659_v25 }
0x171b   :  { %1677 = vst.msk [vmem:[#allocation2] sm:$0x1] %vm1676_vm12, %v1675_v26 }
0x171c   :  { %2125 = shalt.err (!%p2122_p4)
}
0x171d   :  { %s2126_s12 = scalar_lea.hbm %s2645_s20, 16 }
0x171e   :  { %p2127_p5 = scmp.ne.s32.totalorder %s2645_s20, %s2126_s12  ;;  %p2130_p6 = scmp.lt.u32.totalorder %s2126_s12, %s2645_s20 }
0x1720   :  { %p2132_p7 = pnand %p2130_p6, %p2127_p5 }
0x1722   :  { %2135 = shalt.err (!%p2132_p7)
}
0x1723   :  { %1723 = dma.vmem_to_hbm [thread:$0]  %s1721_s27, 16, %s2645_s20, [#allocation3]   ;;  %v1709_v27 = vcvt.f32.s32 %v1703_v13 }
0x1725   :  { %v1710_v48 = vshll.u32 %v1709_v27, 16 }
0x175f   :  { %v1707_v28 = vpop.xlane.xlu1 %1706 }
0x1760   :  { %v1708_v15 = vcvt.f32.s32 %v1707_v28 }
0x1762   :  { %v1711_v29 = vadd.s32 %v1710_v48, %v1708_v15 }
0x1764   :  { %1713 = vst.msk [vmem:[%s2646_s21 + $0x8] sm:$0xff] %vm1646_vm8, %v1711_v29 }
0x1765   :  { %2136 = dma.done.wait [#allocation3], 16  }
0x1766   :  { %2137 = vsyncadd [#allocation3], 4294967280 }
0x1767   :  { %1731 = vsyncpa [#allocation3], 1 }

</bundles_post_ra>
